<compile_context>
chip_gen: v7x
topology: tpu7x:2x2x1
jax: 0.10.0
libtpu: 0.0.40
codegen_flags: <defaults>
</compile_context>

<pallas_src>
import functools

import jax
import jax.numpy as jnp
from jax.experimental import pallas as pl
from jax.experimental.pallas import tpu as pltpu


# ----------------------------------------------------------------------------
# In-kernel helpers (pure jnp, f32 math)
# ----------------------------------------------------------------------------
def _ln(x, g, b, eps):
    mu = jnp.mean(x, axis=-1, keepdims=True)
    xc = x - mu
    var = jnp.mean(xc * xc, axis=-1, keepdims=True)
    return xc * jax.lax.rsqrt(var + eps) * g + b


def _gelu(y):
    # TODO(synk): HF BERT uses erf-GELU; tanh approximation is numerically close.
    c = 0.7978845608028654  # sqrt(2/pi)
    return 0.5 * y * (1.0 + jnp.tanh(c * (y + 0.044715 * y * y * y)))


# ----------------------------------------------------------------------------
# Single fused Pallas kernel: embeddings -> L encoder layers -> pooler -> logits
# ----------------------------------------------------------------------------
def _fused_bert_kernel(ids_ref, tt_ref, bias_ref,
                       wtemb_ref, pemb_ref, eg_ref, eb_ref,
                       wqkv_ref, bqkv_ref, wo_ref, bo_ref, ln1g_ref, ln1b_ref,
                       wi_ref, bi_ref, wf_ref, bf_ref, ln2g_ref, ln2b_ref,
                       poolw_ref, poolb_ref, clsw_ref, clsb_ref,
                       logits_ref,
                       *, B, S, nH, Dh, L, V, TV, eps):
    H = nH * Dh
    BS = B * S
    bf16 = jnp.bfloat16
    f32 = jnp.float32

    # ---- embeddings: combined word+type "two-hot" -> single MXU gather ----
    ids = ids_ref[...]                                   # (BS, 1) int32, word ids
    tt = tt_ref[...]                                     # (BS, 1) int32, type ids
    VT = V + TV
    iota = jax.lax.broadcasted_iota(jnp.int32, (BS, VT), 1)
    two_hot = jnp.where((ids == iota) | ((tt + V) == iota), 1.0, 0.0).astype(bf16)
    emb = jnp.dot(two_hot, wtemb_ref[...], preferred_element_type=f32)   # (BS, H)

    # position embedding: rows 0..S-1, repeated per batch (rows ordered (b, s))
    pe = pemb_ref[0:S, :]                                # (S, H) f32
    emb = emb + jnp.concatenate([pe] * B, axis=0)        # (BS, H)

    x = _ln(emb, eg_ref[...], eb_ref[...], eps)          # f32 residual stream

    bias = bias_ref[...]                                 # (T, T) additive attention bias

    # ---- encoder layers (static unroll, everything VMEM-resident) ----
    for l in range(L):
        # fused QKV projection; 1/sqrt(Dh) pre-folded into the Q columns of wqkv
        qkv = jnp.dot(x.astype(bf16), wqkv_ref[l],
                      preferred_element_type=f32) + bqkv_ref[l]          # (BS, 3H)

        # stack all heads onto the sublane axis: rows ordered (h, b, s)
        def stack(base):
            return jnp.concatenate(
                [qkv[:, base + h * Dh: base + (h + 1) * Dh] for h in range(nH)],
                axis=0).astype(bf16)                                     # (nH*BS, Dh)

        qs, ks, vs = stack(0), stack(H), stack(2 * H)

        # block-diagonal attention: one score dot + one softmax + one P@V
        s = jax.lax.dot_general(qs, ks, (((1,), (1,)), ((), ())),
                                preferred_element_type=f32)              # (T, T)
        s = s + bias
        m = jnp.max(s, axis=-1, keepdims=True)
        p = jnp.exp(s - m)
        p = p * pl.reciprocal(jnp.sum(p, axis=-1, keepdims=True), approx=True)
        ctx_s = jnp.dot(p.astype(bf16), vs, preferred_element_type=f32)  # (T, Dh)

        # un-stack heads back onto lanes: (nH*BS, Dh) -> (BS, H), cols (h, d)
        ctx = jnp.concatenate(
            [ctx_s[h * BS:(h + 1) * BS, :] for h in range(nH)], axis=1)

        # attention output projection + residual + LayerNorm1
        attn = jnp.dot(ctx.astype(bf16), wo_ref[l],
                       preferred_element_type=f32) + bo_ref[l]
        h1 = _ln(x + attn, ln1g_ref[l], ln1b_ref[l], eps)

        # FFN (GELU) + residual + LayerNorm2
        inter = _gelu(jnp.dot(h1.astype(bf16), wi_ref[l],
                              preferred_element_type=f32) + bi_ref[l])
        ffn = jnp.dot(inter.astype(bf16), wf_ref[l],
                      preferred_element_type=f32) + bf_ref[l]
        x = _ln(h1 + ffn, ln2g_ref[l], ln2b_ref[l], eps)

    # ---- pooler ([CLS] row of each batch element) + classifier head ----
    cls = jnp.concatenate([x[b * S:b * S + 1, :] for b in range(B)], axis=0)  # (B, H)
    pooled = jnp.tanh(jnp.dot(cls.astype(bf16), poolw_ref[...],
                              preferred_element_type=f32) + poolb_ref[...])
    logits_ref[...] = jnp.dot(pooled.astype(bf16), clsw_ref[...],
                              preferred_element_type=f32) + clsb_ref[...]


# ----------------------------------------------------------------------------
# Model: tiny BertForSequenceClassification (synthetic deterministic weights)
# ----------------------------------------------------------------------------
class Config:
    vocab_size = 100
    hidden = 32
    num_layers = 2
    num_heads = 2
    intermediate = 64
    max_position = 16
    type_vocab = 2
    num_classes = 2


def init_params(cfg, key):
    std = 0.02
    H, I, L = cfg.hidden, cfg.intermediate, cfg.num_layers
    Dh = H // cfg.num_heads
    scale = 1.0 / float(Dh) ** 0.5

    def nrm(k, shape, dtype=jnp.float32):
        return (jax.random.normal(k, shape, dtype=jnp.float32) * std).astype(dtype)

    keys = jax.random.split(key, 8 + L)
    word_emb = nrm(keys[0], (cfg.vocab_size, H), jnp.bfloat16)
    type_emb = nrm(keys[2], (cfg.type_vocab, H), jnp.bfloat16)
    params = {
        # combined word+type table for the in-kernel one-hot MXU gather
        "wt_emb": jnp.concatenate([word_emb, type_emb], axis=0),   # (V+TV, H) bf16
        "pos_emb": nrm(keys[1], (cfg.max_position, H)),            # f32
        "emb_ln_g": jnp.ones((1, H), jnp.float32),
        "emb_ln_b": jnp.zeros((1, H), jnp.float32),
    }

    wqkv, wo, wi, wf = [], [], [], []
    for li in range(L):
        lk = jax.random.split(keys[3 + li], 6)
        wq = nrm(lk[0], (H, H)) * scale        # fold 1/sqrt(Dh) into Q projection
        wk = nrm(lk[1], (H, H))                # (Q bias is zero, so no bias scaling)
        wv = nrm(lk[2], (H, H))
        wqkv.append(jnp.concatenate([wq, wk, wv], axis=1).astype(jnp.bfloat16))
        wo.append(nrm(lk[3], (H, H), jnp.bfloat16))
        wi.append(nrm(lk[4], (H, I), jnp.bfloat16))
        wf.append(nrm(lk[5], (I, H), jnp.bfloat16))

    params.update(
        wqkv=jnp.stack(wqkv), bqkv=jnp.zeros((L, 1, 3 * H), jnp.float32),
        wo=jnp.stack(wo), bo=jnp.zeros((L, 1, H), jnp.float32),
        ln1_g=jnp.ones((L, 1, H), jnp.float32), ln1_b=jnp.zeros((L, 1, H), jnp.float32),
        wi=jnp.stack(wi), bi=jnp.zeros((L, 1, I), jnp.float32),
        wf=jnp.stack(wf), bf=jnp.zeros((L, 1, H), jnp.float32),
        ln2_g=jnp.ones((L, 1, H), jnp.float32), ln2_b=jnp.zeros((L, 1, H), jnp.float32),
        pool_w=nrm(keys[3 + L], (H, H), jnp.bfloat16),
        pool_b=jnp.zeros((1, H), jnp.float32),
        cls_w=nrm(keys[4 + L], (H, cfg.num_classes), jnp.bfloat16),
        cls_b=jnp.zeros((1, cfg.num_classes), jnp.float32),
    )
    return params


def my_model_forward(params, cfg, input_ids, attn_masks, token_type_ids):
    """Equivalent of MyModel.forward -> BertForSequenceClassification logits."""
    B, S = input_ids.shape
    H, nH = cfg.hidden, cfg.num_heads
    Dh = H // nH
    BS = B * S
    T = nH * BS                                            # stacked (head, batch, seq) rows

    ids = input_ids.reshape(BS, 1).astype(jnp.int32)
    tt = token_type_ids.reshape(BS, 1).astype(jnp.int32)

    # Additive attention bias for the (head, batch)-stacked (T, T) score matrix:
    #   block-diagonal structure (0 in-block, -1e9 off-block; constant-folds under jit)
    # + per-column key-padding bias from attn_masks (built once per forward).
    pad = (1.0 - attn_masks.astype(jnp.float32)) * -1e9                  # (B, S)
    col_pad = jnp.tile(pad[None, :, :], (nH, 1, 1)).reshape(1, T)        # (1, T), (h,b,s) order
    blk = jnp.arange(T, dtype=jnp.int32) // S
    blockdiag = jnp.where(blk[:, None] == blk[None, :], 0.0, -1e9).astype(jnp.float32)
    bias = blockdiag + col_pad                                           # (T, T)

    kern = functools.partial(
        _fused_bert_kernel, B=B, S=S, nH=nH, Dh=Dh, L=cfg.num_layers,
        V=cfg.vocab_size, TV=cfg.type_vocab, eps=1e-12)

    args = (ids, tt, bias,
            params["wt_emb"], params["pos_emb"],
            params["emb_ln_g"], params["emb_ln_b"],
            params["wqkv"], params["bqkv"], params["wo"], params["bo"],
            params["ln1_g"], params["ln1_b"],
            params["wi"], params["bi"], params["wf"], params["bf"],
            params["ln2_g"], params["ln2_b"],
            params["pool_w"], params["pool_b"],
            params["cls_w"], params["cls_b"])

    vmem = pl.BlockSpec(memory_space=pltpu.MemorySpace.VMEM)
    # TODO(synk): at real BERT sizes (H=768, S=512, I=3072), tile over S / I and
    # set pltpu.CompilerParams(vmem_limit_bytes=...) — v7x has only 64 MiB VMEM.
    logits = pl.pallas_call(
        kern,
        out_shape=jax.ShapeDtypeStruct((B, cfg.num_classes), jnp.float32),
        in_specs=[vmem] * len(args),
        out_specs=vmem,
    )(*args)
    return logits


if __name__ == "__main__":
    cfg = Config()
    key = jax.random.PRNGKey(0)
    pkey, ikey = jax.random.split(key)

    params = init_params(cfg, pkey)

    B, S = 2, 8
    input_ids = jax.random.randint(ikey, (B, S), 0, cfg.vocab_size, dtype=jnp.int32)
    attn_masks = jnp.ones((B, S), dtype=jnp.int32)
    # mask out the last two positions of the second example (padding)
    attn_masks = attn_masks.at[1, 6:].set(0)
    token_type_ids = jnp.zeros((B, S), dtype=jnp.int32)

    fwd = jax.jit(lambda p, ii, am, tt: my_model_forward(p, cfg, ii, am, tt))
    logits = fwd(params, input_ids, attn_masks, token_type_ids)
    logits = jax.block_until_ready(logits)
    assert logits.shape == (B, cfg.num_classes)
    assert bool(jnp.all(jnp.isfinite(logits)))
    print("KERNEL_OK")
</pallas_src>

<mosaic_0001>
module attributes {stable_mosaic.version = 11 : i64} {
  func.func @_fused_bert_kernel(%arg0: memref<16x1xi32, #tpu.memory_space<vmem>>, %arg1: memref<16x1xi32, #tpu.memory_space<vmem>>, %arg2: memref<32x32xf32, #tpu.memory_space<vmem>>, %arg3: memref<102x32xbf16, #tpu.memory_space<vmem>>, %arg4: memref<16x32xf32, #tpu.memory_space<vmem>>, %arg5: memref<1x32xf32, #tpu.memory_space<vmem>>, %arg6: memref<1x32xf32, #tpu.memory_space<vmem>>, %arg7: memref<2x32x96xbf16, #tpu.memory_space<vmem>>, %arg8: memref<2x1x96xf32, #tpu.memory_space<vmem>>, %arg9: memref<2x32x32xbf16, #tpu.memory_space<vmem>>, %arg10: memref<2x1x32xf32, #tpu.memory_space<vmem>>, %arg11: memref<2x1x32xf32, #tpu.memory_space<vmem>>, %arg12: memref<2x1x32xf32, #tpu.memory_space<vmem>>, %arg13: memref<2x32x64xbf16, #tpu.memory_space<vmem>>, %arg14: memref<2x1x64xf32, #tpu.memory_space<vmem>>, %arg15: memref<2x64x32xbf16, #tpu.memory_space<vmem>>, %arg16: memref<2x1x32xf32, #tpu.memory_space<vmem>>, %arg17: memref<2x1x32xf32, #tpu.memory_space<vmem>>, %arg18: memref<2x1x32xf32, #tpu.memory_space<vmem>>, %arg19: memref<32x32xbf16, #tpu.memory_space<vmem>>, %arg20: memref<1x32xf32, #tpu.memory_space<vmem>>, %arg21: memref<32x2xbf16, #tpu.memory_space<vmem>>, %arg22: memref<1x2xf32, #tpu.memory_space<vmem>>, %arg23: memref<2x2xf32, #tpu.memory_space<vmem>>) attributes {dimension_semantics = [], scalar_prefetch = 0 : i64, scratch_operands = 0 : i64, tpu.core_type = #tpu.core_type<tc>} {
    %c0 = arith.constant 0 : index
    %c0_0 = arith.constant 0 : index
    %0 = vector.load %arg0[%c0, %c0_0] : memref<16x1xi32, #tpu.memory_space<vmem>>, vector<16x1xi32>
    %c0_1 = arith.constant 0 : index
    %c0_2 = arith.constant 0 : index
    %1 = vector.load %arg1[%c0_1, %c0_2] : memref<16x1xi32, #tpu.memory_space<vmem>>, vector<16x1xi32>
    %2 = tpu.iota {dimensions = array<i32: 1>} : vector<16x102xi32>
    %3 = vector.broadcast %0 : vector<16x1xi32> to vector<16x102xi32>
    %4 = arith.cmpi eq, %3, %2 : vector<16x102xi32>
    %c100_i32 = arith.constant 100 : i32
    %5 = vector.broadcast %c100_i32 : i32 to vector<16x1xi32>
    %6 = arith.addi %1, %5 : vector<16x1xi32>
    %7 = vector.broadcast %6 : vector<16x1xi32> to vector<16x102xi32>
    %8 = arith.cmpi eq, %7, %2 : vector<16x102xi32>
    %9 = arith.ori %4, %8 : vector<16x102xi1>
    %cst = arith.constant 1.000000e+00 : f32
    %cst_3 = arith.constant 0.000000e+00 : f32
    %10 = vector.broadcast %cst : f32 to vector<16x102xf32>
    %11 = vector.broadcast %cst_3 : f32 to vector<16x102xf32>
    %12 = arith.select %9, %10, %11 : vector<16x102xi1>, vector<16x102xf32>
    %13 = arith.truncf %12 : vector<16x102xf32> to vector<16x102xbf16>
    %c0_4 = arith.constant 0 : index
    %c0_5 = arith.constant 0 : index
    %14 = vector.load %arg3[%c0_4, %c0_5] : memref<102x32xbf16, #tpu.memory_space<vmem>>, vector<102x32xbf16>
    %cst_6 = arith.constant dense<0.000000e+00> : vector<16x32xf32>
    %15 = tpu.matmul %13, %14, %cst_6 {dimension_numbers = #tpu.dot_dimension_numbers<[1], [0], [0], [1], [0, 0, 1, 1], [], []>} : vector<16x102xbf16>, vector<102x32xbf16>, vector<16x32xf32> -> vector<16x32xf32>
    %c0_7 = arith.constant 0 : index
    %c0_8 = arith.constant 0 : index
    %16 = vector.load %arg4[%c0_7, %c0_8] : memref<16x32xf32, #tpu.memory_space<vmem>>, vector<8x32xf32>
    %17 = tpu.concatenate %16, %16 in 0 : vector<8x32xf32>, vector<8x32xf32> -> vector<16x32xf32>
    %18 = arith.addf %15, %17 : vector<16x32xf32>
    %c0_9 = arith.constant 0 : index
    %c0_10 = arith.constant 0 : index
    %19 = vector.load %arg5[%c0_9, %c0_10] : memref<1x32xf32, #tpu.memory_space<vmem>>, vector<1x32xf32>
    %c0_11 = arith.constant 0 : index
    %c0_12 = arith.constant 0 : index
    %20 = vector.load %arg6[%c0_11, %c0_12] : memref<1x32xf32, #tpu.memory_space<vmem>>, vector<1x32xf32>
    %cst_13 = arith.constant dense<0.000000e+00> : vector<16xf32>
    %21 = vector.multi_reduction <add>, %18, %cst_13 [1] : vector<16x32xf32> to vector<16xf32>
    %22 = vector.shape_cast %21 : vector<16xf32> to vector<16x1xf32>
    %cst_14 = arith.constant 3.200000e+01 : f32
    %23 = vector.broadcast %cst_14 : f32 to vector<16x1xf32>
    %24 = arith.divf %22, %23 : vector<16x1xf32>
    %25 = vector.broadcast %24 : vector<16x1xf32> to vector<16x32xf32>
    %26 = arith.subf %18, %25 : vector<16x32xf32>
    %27 = arith.mulf %26, %26 : vector<16x32xf32>
    %cst_15 = arith.constant dense<0.000000e+00> : vector<16xf32>
    %28 = vector.multi_reduction <add>, %27, %cst_15 [1] : vector<16x32xf32> to vector<16xf32>
    %29 = vector.shape_cast %28 : vector<16xf32> to vector<16x1xf32>
    %cst_16 = arith.constant 3.200000e+01 : f32
    %30 = vector.broadcast %cst_16 : f32 to vector<16x1xf32>
    %31 = arith.divf %29, %30 : vector<16x1xf32>
    %cst_17 = arith.constant 9.99999996E-13 : f32
    %32 = vector.broadcast %cst_17 : f32 to vector<16x1xf32>
    %33 = arith.addf %31, %32 : vector<16x1xf32>
    %34 = math.rsqrt %33 : vector<16x1xf32>
    %35 = vector.broadcast %34 : vector<16x1xf32> to vector<16x32xf32>
    %36 = arith.mulf %26, %35 : vector<16x32xf32>
    %37 = vector.broadcast %19 : vector<1x32xf32> to vector<16x32xf32>
    %38 = arith.mulf %36, %37 : vector<16x32xf32>
    %39 = vector.broadcast %20 : vector<1x32xf32> to vector<16x32xf32>
    %40 = arith.addf %38, %39 : vector<16x32xf32>
    %c0_18 = arith.constant 0 : index
    %c0_19 = arith.constant 0 : index
    %41 = vector.load %arg2[%c0_18, %c0_19] : memref<32x32xf32, #tpu.memory_space<vmem>>, vector<32x32xf32>
    %42 = arith.truncf %40 : vector<16x32xf32> to vector<16x32xbf16>
    %c0_20 = arith.constant 0 : index
    %c0_21 = arith.constant 0 : index
    %c0_22 = arith.constant 0 : index
    %43 = vector.load %arg7[%c0_20, %c0_21, %c0_22] : memref<2x32x96xbf16, #tpu.memory_space<vmem>>, vector<1x32x96xbf16>
    %44 = vector.shape_cast %43 : vector<1x32x96xbf16> to vector<32x96xbf16>
    %cst_23 = arith.constant dense<0.000000e+00> : vector<16x96xf32>
    %45 = tpu.matmul %42, %44, %cst_23 {dimension_numbers = #tpu.dot_dimension_numbers<[1], [0], [0], [1], [0, 0, 1, 1], [], []>} : vector<16x32xbf16>, vector<32x96xbf16>, vector<16x96xf32> -> vector<16x96xf32>
    %c0_24 = arith.constant 0 : index
    %c0_25 = arith.constant 0 : index
    %c0_26 = arith.constant 0 : index
    %46 = vector.load %arg8[%c0_24, %c0_25, %c0_26] : memref<2x1x96xf32, #tpu.memory_space<vmem>>, vector<1x1x96xf32>
    %47 = vector.shape_cast %46 : vector<1x1x96xf32> to vector<1x96xf32>
    %48 = vector.broadcast %47 : vector<1x96xf32> to vector<16x96xf32>
    %49 = arith.addf %45, %48 : vector<16x96xf32>
    %50 = vector.extract_strided_slice %49 {offsets = [0, 0], sizes = [16, 16], strides = [1, 1]} : vector<16x96xf32> to vector<16x16xf32>
    %51 = vector.extract_strided_slice %49 {offsets = [0, 16], sizes = [16, 16], strides = [1, 1]} : vector<16x96xf32> to vector<16x16xf32>
    %52 = tpu.concatenate %50, %51 in 0 : vector<16x16xf32>, vector<16x16xf32> -> vector<32x16xf32>
    %53 = arith.truncf %52 : vector<32x16xf32> to vector<32x16xbf16>
    %54 = vector.extract_strided_slice %49 {offsets = [0, 32], sizes = [16, 16], strides = [1, 1]} : vector<16x96xf32> to vector<16x16xf32>
    %55 = vector.extract_strided_slice %49 {offsets = [0, 48], sizes = [16, 16], strides = [1, 1]} : vector<16x96xf32> to vector<16x16xf32>
    %56 = tpu.concatenate %54, %55 in 0 : vector<16x16xf32>, vector<16x16xf32> -> vector<32x16xf32>
    %57 = arith.truncf %56 : vector<32x16xf32> to vector<32x16xbf16>
    %58 = vector.extract_strided_slice %49 {offsets = [0, 64], sizes = [16, 16], strides = [1, 1]} : vector<16x96xf32> to vector<16x16xf32>
    %59 = vector.extract_strided_slice %49 {offsets = [0, 80], sizes = [16, 16], strides = [1, 1]} : vector<16x96xf32> to vector<16x16xf32>
    %60 = tpu.concatenate %58, %59 in 0 : vector<16x16xf32>, vector<16x16xf32> -> vector<32x16xf32>
    %61 = arith.truncf %60 : vector<32x16xf32> to vector<32x16xbf16>
    %cst_27 = arith.constant dense<0.000000e+00> : vector<32x32xf32>
    %62 = tpu.matmul %53, %57, %cst_27 {dimension_numbers = #tpu.dot_dimension_numbers<[1], [1], [0], [0], [0, 0, 1, 0], [], []>} : vector<32x16xbf16>, vector<32x16xbf16>, vector<32x32xf32> -> vector<32x32xf32>
    %63 = arith.addf %62, %41 : vector<32x32xf32>
    %cst_28 = arith.constant dense<0xFF800000> : vector<32xf32>
    %64 = vector.multi_reduction <maximumf>, %63, %cst_28 [1] : vector<32x32xf32> to vector<32xf32>
    %65 = vector.shape_cast %64 : vector<32xf32> to vector<32x1xf32>
    %66 = vector.broadcast %65 : vector<32x1xf32> to vector<32x32xf32>
    %67 = arith.subf %63, %66 : vector<32x32xf32>
    %68 = math.exp %67 : vector<32x32xf32>
    %cst_29 = arith.constant dense<0.000000e+00> : vector<32xf32>
    %69 = vector.multi_reduction <add>, %68, %cst_29 [1] : vector<32x32xf32> to vector<32xf32>
    %70 = vector.shape_cast %69 : vector<32xf32> to vector<32x1xf32>
    %71 = tpu.reciprocal %70 {approx = true} : vector<32x1xf32> -> vector<32x1xf32>
    %72 = vector.broadcast %71 : vector<32x1xf32> to vector<32x32xf32>
    %73 = arith.mulf %68, %72 : vector<32x32xf32>
    %74 = arith.truncf %73 : vector<32x32xf32> to vector<32x32xbf16>
    %cst_30 = arith.constant dense<0.000000e+00> : vector<32x16xf32>
    %75 = tpu.matmul %74, %61, %cst_30 {dimension_numbers = #tpu.dot_dimension_numbers<[1], [0], [0], [1], [0, 0, 1, 1], [], []>} : vector<32x32xbf16>, vector<32x16xbf16>, vector<32x16xf32> -> vector<32x16xf32>
    %76 = vector.extract_strided_slice %75 {offsets = [0, 0], sizes = [16, 16], strides = [1, 1]} : vector<32x16xf32> to vector<16x16xf32>
    %77 = vector.extract_strided_slice %75 {offsets = [16, 0], sizes = [16, 16], strides = [1, 1]} : vector<32x16xf32> to vector<16x16xf32>
    %78 = tpu.concatenate %76, %77 in 1 : vector<16x16xf32>, vector<16x16xf32> -> vector<16x32xf32>
    %79 = arith.truncf %78 : vector<16x32xf32> to vector<16x32xbf16>
    %c0_31 = arith.constant 0 : index
    %c0_32 = arith.constant 0 : index
    %c0_33 = arith.constant 0 : index
    %80 = vector.load %arg9[%c0_31, %c0_32, %c0_33] : memref<2x32x32xbf16, #tpu.memory_space<vmem>>, vector<1x32x32xbf16>
    %81 = vector.shape_cast %80 : vector<1x32x32xbf16> to vector<32x32xbf16>
    %cst_34 = arith.constant dense<0.000000e+00> : vector<16x32xf32>
    %82 = tpu.matmul %79, %81, %cst_34 {dimension_numbers = #tpu.dot_dimension_numbers<[1], [0], [0], [1], [0, 0, 1, 1], [], []>} : vector<16x32xbf16>, vector<32x32xbf16>, vector<16x32xf32> -> vector<16x32xf32>
    %c0_35 = arith.constant 0 : index
    %c0_36 = arith.constant 0 : index
    %c0_37 = arith.constant 0 : index
    %83 = vector.load %arg10[%c0_35, %c0_36, %c0_37] : memref<2x1x32xf32, #tpu.memory_space<vmem>>, vector<1x1x32xf32>
    %84 = vector.shape_cast %83 : vector<1x1x32xf32> to vector<1x32xf32>
    %85 = vector.broadcast %84 : vector<1x32xf32> to vector<16x32xf32>
    %86 = arith.addf %82, %85 : vector<16x32xf32>
    %87 = arith.addf %40, %86 : vector<16x32xf32>
    %c0_38 = arith.constant 0 : index
    %c0_39 = arith.constant 0 : index
    %c0_40 = arith.constant 0 : index
    %88 = vector.load %arg11[%c0_38, %c0_39, %c0_40] : memref<2x1x32xf32, #tpu.memory_space<vmem>>, vector<1x1x32xf32>
    %89 = vector.shape_cast %88 : vector<1x1x32xf32> to vector<1x32xf32>
    %c0_41 = arith.constant 0 : index
    %c0_42 = arith.constant 0 : index
    %c0_43 = arith.constant 0 : index
    %90 = vector.load %arg12[%c0_41, %c0_42, %c0_43] : memref<2x1x32xf32, #tpu.memory_space<vmem>>, vector<1x1x32xf32>
    %91 = vector.shape_cast %90 : vector<1x1x32xf32> to vector<1x32xf32>
    %cst_44 = arith.constant dense<0.000000e+00> : vector<16xf32>
    %92 = vector.multi_reduction <add>, %87, %cst_44 [1] : vector<16x32xf32> to vector<16xf32>
    %93 = vector.shape_cast %92 : vector<16xf32> to vector<16x1xf32>
    %cst_45 = arith.constant 3.200000e+01 : f32
    %94 = vector.broadcast %cst_45 : f32 to vector<16x1xf32>
    %95 = arith.divf %93, %94 : vector<16x1xf32>
    %96 = vector.broadcast %95 : vector<16x1xf32> to vector<16x32xf32>
    %97 = arith.subf %87, %96 : vector<16x32xf32>
    %98 = arith.mulf %97, %97 : vector<16x32xf32>
    %cst_46 = arith.constant dense<0.000000e+00> : vector<16xf32>
    %99 = vector.multi_reduction <add>, %98, %cst_46 [1] : vector<16x32xf32> to vector<16xf32>
    %100 = vector.shape_cast %99 : vector<16xf32> to vector<16x1xf32>
    %cst_47 = arith.constant 3.200000e+01 : f32
    %101 = vector.broadcast %cst_47 : f32 to vector<16x1xf32>
    %102 = arith.divf %100, %101 : vector<16x1xf32>
    %cst_48 = arith.constant 9.99999996E-13 : f32
    %103 = vector.broadcast %cst_48 : f32 to vector<16x1xf32>
    %104 = arith.addf %102, %103 : vector<16x1xf32>
    %105 = math.rsqrt %104 : vector<16x1xf32>
    %106 = vector.broadcast %105 : vector<16x1xf32> to vector<16x32xf32>
    %107 = arith.mulf %97, %106 : vector<16x32xf32>
    %108 = vector.broadcast %89 : vector<1x32xf32> to vector<16x32xf32>
    %109 = arith.mulf %107, %108 : vector<16x32xf32>
    %110 = vector.broadcast %91 : vector<1x32xf32> to vector<16x32xf32>
    %111 = arith.addf %109, %110 : vector<16x32xf32>
    %112 = arith.truncf %111 : vector<16x32xf32> to vector<16x32xbf16>
    %c0_49 = arith.constant 0 : index
    %c0_50 = arith.constant 0 : index
    %c0_51 = arith.constant 0 : index
    %113 = vector.load %arg13[%c0_49, %c0_50, %c0_51] : memref<2x32x64xbf16, #tpu.memory_space<vmem>>, vector<1x32x64xbf16>
    %114 = vector.shape_cast %113 : vector<1x32x64xbf16> to vector<32x64xbf16>
    %cst_52 = arith.constant dense<0.000000e+00> : vector<16x64xf32>
    %115 = tpu.matmul %112, %114, %cst_52 {dimension_numbers = #tpu.dot_dimension_numbers<[1], [0], [0], [1], [0, 0, 1, 1], [], []>} : vector<16x32xbf16>, vector<32x64xbf16>, vector<16x64xf32> -> vector<16x64xf32>
    %c0_53 = arith.constant 0 : index
    %c0_54 = arith.constant 0 : index
    %c0_55 = arith.constant 0 : index
    %116 = vector.load %arg14[%c0_53, %c0_54, %c0_55] : memref<2x1x64xf32, #tpu.memory_space<vmem>>, vector<1x1x64xf32>
    %117 = vector.shape_cast %116 : vector<1x1x64xf32> to vector<1x64xf32>
    %118 = vector.broadcast %117 : vector<1x64xf32> to vector<16x64xf32>
    %119 = arith.addf %115, %118 : vector<16x64xf32>
    %cst_56 = arith.constant 5.000000e-01 : f32
    %120 = vector.broadcast %cst_56 : f32 to vector<16x64xf32>
    %121 = arith.mulf %120, %119 : vector<16x64xf32>
    %cst_57 = arith.constant 4.471500e-02 : f32
    %122 = vector.broadcast %cst_57 : f32 to vector<16x64xf32>
    %123 = arith.mulf %122, %119 : vector<16x64xf32>
    %124 = arith.mulf %123, %119 : vector<16x64xf32>
    %125 = arith.mulf %124, %119 : vector<16x64xf32>
    %126 = arith.addf %119, %125 : vector<16x64xf32>
    %cst_58 = arith.constant 0.797884583 : f32
    %127 = vector.broadcast %cst_58 : f32 to vector<16x64xf32>
    %128 = arith.mulf %127, %126 : vector<16x64xf32>
    %129 = math.tanh %128 : vector<16x64xf32>
    %cst_59 = arith.constant 1.000000e+00 : f32
    %130 = vector.broadcast %cst_59 : f32 to vector<16x64xf32>
    %131 = arith.addf %130, %129 : vector<16x64xf32>
    %132 = arith.mulf %121, %131 : vector<16x64xf32>
    %133 = arith.truncf %132 : vector<16x64xf32> to vector<16x64xbf16>
    %c0_60 = arith.constant 0 : index
    %c0_61 = arith.constant 0 : index
    %c0_62 = arith.constant 0 : index
    %134 = vector.load %arg15[%c0_60, %c0_61, %c0_62] : memref<2x64x32xbf16, #tpu.memory_space<vmem>>, vector<1x64x32xbf16>
    %135 = vector.shape_cast %134 : vector<1x64x32xbf16> to vector<64x32xbf16>
    %cst_63 = arith.constant dense<0.000000e+00> : vector<16x32xf32>
    %136 = tpu.matmul %133, %135, %cst_63 {dimension_numbers = #tpu.dot_dimension_numbers<[1], [0], [0], [1], [0, 0, 1, 1], [], []>} : vector<16x64xbf16>, vector<64x32xbf16>, vector<16x32xf32> -> vector<16x32xf32>
    %c0_64 = arith.constant 0 : index
    %c0_65 = arith.constant 0 : index
    %c0_66 = arith.constant 0 : index
    %137 = vector.load %arg16[%c0_64, %c0_65, %c0_66] : memref<2x1x32xf32, #tpu.memory_space<vmem>>, vector<1x1x32xf32>
    %138 = vector.shape_cast %137 : vector<1x1x32xf32> to vector<1x32xf32>
    %139 = vector.broadcast %138 : vector<1x32xf32> to vector<16x32xf32>
    %140 = arith.addf %136, %139 : vector<16x32xf32>
    %141 = arith.addf %111, %140 : vector<16x32xf32>
    %c0_67 = arith.constant 0 : index
    %c0_68 = arith.constant 0 : index
    %c0_69 = arith.constant 0 : index
    %142 = vector.load %arg17[%c0_67, %c0_68, %c0_69] : memref<2x1x32xf32, #tpu.memory_space<vmem>>, vector<1x1x32xf32>
    %143 = vector.shape_cast %142 : vector<1x1x32xf32> to vector<1x32xf32>
    %c0_70 = arith.constant 0 : index
    %c0_71 = arith.constant 0 : index
    %c0_72 = arith.constant 0 : index
    %144 = vector.load %arg18[%c0_70, %c0_71, %c0_72] : memref<2x1x32xf32, #tpu.memory_space<vmem>>, vector<1x1x32xf32>
    %145 = vector.shape_cast %144 : vector<1x1x32xf32> to vector<1x32xf32>
    %cst_73 = arith.constant dense<0.000000e+00> : vector<16xf32>
    %146 = vector.multi_reduction <add>, %141, %cst_73 [1] : vector<16x32xf32> to vector<16xf32>
    %147 = vector.shape_cast %146 : vector<16xf32> to vector<16x1xf32>
    %cst_74 = arith.constant 3.200000e+01 : f32
    %148 = vector.broadcast %cst_74 : f32 to vector<16x1xf32>
    %149 = arith.divf %147, %148 : vector<16x1xf32>
    %150 = vector.broadcast %149 : vector<16x1xf32> to vector<16x32xf32>
    %151 = arith.subf %141, %150 : vector<16x32xf32>
    %152 = arith.mulf %151, %151 : vector<16x32xf32>
    %cst_75 = arith.constant dense<0.000000e+00> : vector<16xf32>
    %153 = vector.multi_reduction <add>, %152, %cst_75 [1] : vector<16x32xf32> to vector<16xf32>
    %154 = vector.shape_cast %153 : vector<16xf32> to vector<16x1xf32>
    %cst_76 = arith.constant 3.200000e+01 : f32
    %155 = vector.broadcast %cst_76 : f32 to vector<16x1xf32>
    %156 = arith.divf %154, %155 : vector<16x1xf32>
    %cst_77 = arith.constant 9.99999996E-13 : f32
    %157 = vector.broadcast %cst_77 : f32 to vector<16x1xf32>
    %158 = arith.addf %156, %157 : vector<16x1xf32>
    %159 = math.rsqrt %158 : vector<16x1xf32>
    %160 = vector.broadcast %159 : vector<16x1xf32> to vector<16x32xf32>
    %161 = arith.mulf %151, %160 : vector<16x32xf32>
    %162 = vector.broadcast %143 : vector<1x32xf32> to vector<16x32xf32>
    %163 = arith.mulf %161, %162 : vector<16x32xf32>
    %164 = vector.broadcast %145 : vector<1x32xf32> to vector<16x32xf32>
    %165 = arith.addf %163, %164 : vector<16x32xf32>
    %166 = arith.truncf %165 : vector<16x32xf32> to vector<16x32xbf16>
    %c1 = arith.constant 1 : index
    %c0_78 = arith.constant 0 : index
    %c0_79 = arith.constant 0 : index
    %167 = vector.load %arg7[%c1, %c0_78, %c0_79] : memref<2x32x96xbf16, #tpu.memory_space<vmem>>, vector<1x32x96xbf16>
    %168 = vector.shape_cast %167 : vector<1x32x96xbf16> to vector<32x96xbf16>
    %cst_80 = arith.constant dense<0.000000e+00> : vector<16x96xf32>
    %169 = tpu.matmul %166, %168, %cst_80 {dimension_numbers = #tpu.dot_dimension_numbers<[1], [0], [0], [1], [0, 0, 1, 1], [], []>} : vector<16x32xbf16>, vector<32x96xbf16>, vector<16x96xf32> -> vector<16x96xf32>
    %c1_81 = arith.constant 1 : index
    %c0_82 = arith.constant 0 : index
    %c0_83 = arith.constant 0 : index
    %170 = vector.load %arg8[%c1_81, %c0_82, %c0_83] : memref<2x1x96xf32, #tpu.memory_space<vmem>>, vector<1x1x96xf32>
    %171 = vector.shape_cast %170 : vector<1x1x96xf32> to vector<1x96xf32>
    %172 = vector.broadcast %171 : vector<1x96xf32> to vector<16x96xf32>
    %173 = arith.addf %169, %172 : vector<16x96xf32>
    %174 = vector.extract_strided_slice %173 {offsets = [0, 0], sizes = [16, 16], strides = [1, 1]} : vector<16x96xf32> to vector<16x16xf32>
    %175 = vector.extract_strided_slice %173 {offsets = [0, 16], sizes = [16, 16], strides = [1, 1]} : vector<16x96xf32> to vector<16x16xf32>
    %176 = tpu.concatenate %174, %175 in 0 : vector<16x16xf32>, vector<16x16xf32> -> vector<32x16xf32>
    %177 = arith.truncf %176 : vector<32x16xf32> to vector<32x16xbf16>
    %178 = vector.extract_strided_slice %173 {offsets = [0, 32], sizes = [16, 16], strides = [1, 1]} : vector<16x96xf32> to vector<16x16xf32>
    %179 = vector.extract_strided_slice %173 {offsets = [0, 48], sizes = [16, 16], strides = [1, 1]} : vector<16x96xf32> to vector<16x16xf32>
    %180 = tpu.concatenate %178, %179 in 0 : vector<16x16xf32>, vector<16x16xf32> -> vector<32x16xf32>
    %181 = arith.truncf %180 : vector<32x16xf32> to vector<32x16xbf16>
    %182 = vector.extract_strided_slice %173 {offsets = [0, 64], sizes = [16, 16], strides = [1, 1]} : vector<16x96xf32> to vector<16x16xf32>
    %183 = vector.extract_strided_slice %173 {offsets = [0, 80], sizes = [16, 16], strides = [1, 1]} : vector<16x96xf32> to vector<16x16xf32>
    %184 = tpu.concatenate %182, %183 in 0 : vector<16x16xf32>, vector<16x16xf32> -> vector<32x16xf32>
    %185 = arith.truncf %184 : vector<32x16xf32> to vector<32x16xbf16>
    %cst_84 = arith.constant dense<0.000000e+00> : vector<32x32xf32>
    %186 = tpu.matmul %177, %181, %cst_84 {dimension_numbers = #tpu.dot_dimension_numbers<[1], [1], [0], [0], [0, 0, 1, 0], [], []>} : vector<32x16xbf16>, vector<32x16xbf16>, vector<32x32xf32> -> vector<32x32xf32>
    %187 = arith.addf %186, %41 : vector<32x32xf32>
    %cst_85 = arith.constant dense<0xFF800000> : vector<32xf32>
    %188 = vector.multi_reduction <maximumf>, %187, %cst_85 [1] : vector<32x32xf32> to vector<32xf32>
    %189 = vector.shape_cast %188 : vector<32xf32> to vector<32x1xf32>
    %190 = vector.broadcast %189 : vector<32x1xf32> to vector<32x32xf32>
    %191 = arith.subf %187, %190 : vector<32x32xf32>
    %192 = math.exp %191 : vector<32x32xf32>
    %cst_86 = arith.constant dense<0.000000e+00> : vector<32xf32>
    %193 = vector.multi_reduction <add>, %192, %cst_86 [1] : vector<32x32xf32> to vector<32xf32>
    %194 = vector.shape_cast %193 : vector<32xf32> to vector<32x1xf32>
    %195 = tpu.reciprocal %194 {approx = true} : vector<32x1xf32> -> vector<32x1xf32>
    %196 = vector.broadcast %195 : vector<32x1xf32> to vector<32x32xf32>
    %197 = arith.mulf %192, %196 : vector<32x32xf32>
    %198 = arith.truncf %197 : vector<32x32xf32> to vector<32x32xbf16>
    %cst_87 = arith.constant dense<0.000000e+00> : vector<32x16xf32>
    %199 = tpu.matmul %198, %185, %cst_87 {dimension_numbers = #tpu.dot_dimension_numbers<[1], [0], [0], [1], [0, 0, 1, 1], [], []>} : vector<32x32xbf16>, vector<32x16xbf16>, vector<32x16xf32> -> vector<32x16xf32>
    %200 = vector.extract_strided_slice %199 {offsets = [0, 0], sizes = [16, 16], strides = [1, 1]} : vector<32x16xf32> to vector<16x16xf32>
    %201 = vector.extract_strided_slice %199 {offsets = [16, 0], sizes = [16, 16], strides = [1, 1]} : vector<32x16xf32> to vector<16x16xf32>
    %202 = tpu.concatenate %200, %201 in 1 : vector<16x16xf32>, vector<16x16xf32> -> vector<16x32xf32>
    %203 = arith.truncf %202 : vector<16x32xf32> to vector<16x32xbf16>
    %c1_88 = arith.constant 1 : index
    %c0_89 = arith.constant 0 : index
    %c0_90 = arith.constant 0 : index
    %204 = vector.load %arg9[%c1_88, %c0_89, %c0_90] : memref<2x32x32xbf16, #tpu.memory_space<vmem>>, vector<1x32x32xbf16>
    %205 = vector.shape_cast %204 : vector<1x32x32xbf16> to vector<32x32xbf16>
    %cst_91 = arith.constant dense<0.000000e+00> : vector<16x32xf32>
    %206 = tpu.matmul %203, %205, %cst_91 {dimension_numbers = #tpu.dot_dimension_numbers<[1], [0], [0], [1], [0, 0, 1, 1], [], []>} : vector<16x32xbf16>, vector<32x32xbf16>, vector<16x32xf32> -> vector<16x32xf32>
    %c1_92 = arith.constant 1 : index
    %c0_93 = arith.constant 0 : index
    %c0_94 = arith.constant 0 : index
    %207 = vector.load %arg10[%c1_92, %c0_93, %c0_94] : memref<2x1x32xf32, #tpu.memory_space<vmem>>, vector<1x1x32xf32>
    %208 = vector.shape_cast %207 : vector<1x1x32xf32> to vector<1x32xf32>
    %209 = vector.broadcast %208 : vector<1x32xf32> to vector<16x32xf32>
    %210 = arith.addf %206, %209 : vector<16x32xf32>
    %211 = arith.addf %165, %210 : vector<16x32xf32>
    %c1_95 = arith.constant 1 : index
    %c0_96 = arith.constant 0 : index
    %c0_97 = arith.constant 0 : index
    %212 = vector.load %arg11[%c1_95, %c0_96, %c0_97] : memref<2x1x32xf32, #tpu.memory_space<vmem>>, vector<1x1x32xf32>
    %213 = vector.shape_cast %212 : vector<1x1x32xf32> to vector<1x32xf32>
    %c1_98 = arith.constant 1 : index
    %c0_99 = arith.constant 0 : index
    %c0_100 = arith.constant 0 : index
    %214 = vector.load %arg12[%c1_98, %c0_99, %c0_100] : memref<2x1x32xf32, #tpu.memory_space<vmem>>, vector<1x1x32xf32>
    %215 = vector.shape_cast %214 : vector<1x1x32xf32> to vector<1x32xf32>
    %cst_101 = arith.constant dense<0.000000e+00> : vector<16xf32>
    %216 = vector.multi_reduction <add>, %211, %cst_101 [1] : vector<16x32xf32> to vector<16xf32>
    %217 = vector.shape_cast %216 : vector<16xf32> to vector<16x1xf32>
    %cst_102 = arith.constant 3.200000e+01 : f32
    %218 = vector.broadcast %cst_102 : f32 to vector<16x1xf32>
    %219 = arith.divf %217, %218 : vector<16x1xf32>
    %220 = vector.broadcast %219 : vector<16x1xf32> to vector<16x32xf32>
    %221 = arith.subf %211, %220 : vector<16x32xf32>
    %222 = arith.mulf %221, %221 : vector<16x32xf32>
    %cst_103 = arith.constant dense<0.000000e+00> : vector<16xf32>
    %223 = vector.multi_reduction <add>, %222, %cst_103 [1] : vector<16x32xf32> to vector<16xf32>
    %224 = vector.shape_cast %223 : vector<16xf32> to vector<16x1xf32>
    %cst_104 = arith.constant 3.200000e+01 : f32
    %225 = vector.broadcast %cst_104 : f32 to vector<16x1xf32>
    %226 = arith.divf %224, %225 : vector<16x1xf32>
    %cst_105 = arith.constant 9.99999996E-13 : f32
    %227 = vector.broadcast %cst_105 : f32 to vector<16x1xf32>
    %228 = arith.addf %226, %227 : vector<16x1xf32>
    %229 = math.rsqrt %228 : vector<16x1xf32>
    %230 = vector.broadcast %229 : vector<16x1xf32> to vector<16x32xf32>
    %231 = arith.mulf %221, %230 : vector<16x32xf32>
    %232 = vector.broadcast %213 : vector<1x32xf32> to vector<16x32xf32>
    %233 = arith.mulf %231, %232 : vector<16x32xf32>
    %234 = vector.broadcast %215 : vector<1x32xf32> to vector<16x32xf32>
    %235 = arith.addf %233, %234 : vector<16x32xf32>
    %236 = arith.truncf %235 : vector<16x32xf32> to vector<16x32xbf16>
    %c1_106 = arith.constant 1 : index
    %c0_107 = arith.constant 0 : index
    %c0_108 = arith.constant 0 : index
    %237 = vector.load %arg13[%c1_106, %c0_107, %c0_108] : memref<2x32x64xbf16, #tpu.memory_space<vmem>>, vector<1x32x64xbf16>
    %238 = vector.shape_cast %237 : vector<1x32x64xbf16> to vector<32x64xbf16>
    %cst_109 = arith.constant dense<0.000000e+00> : vector<16x64xf32>
    %239 = tpu.matmul %236, %238, %cst_109 {dimension_numbers = #tpu.dot_dimension_numbers<[1], [0], [0], [1], [0, 0, 1, 1], [], []>} : vector<16x32xbf16>, vector<32x64xbf16>, vector<16x64xf32> -> vector<16x64xf32>
    %c1_110 = arith.constant 1 : index
    %c0_111 = arith.constant 0 : index
    %c0_112 = arith.constant 0 : index
    %240 = vector.load %arg14[%c1_110, %c0_111, %c0_112] : memref<2x1x64xf32, #tpu.memory_space<vmem>>, vector<1x1x64xf32>
    %241 = vector.shape_cast %240 : vector<1x1x64xf32> to vector<1x64xf32>
    %242 = vector.broadcast %241 : vector<1x64xf32> to vector<16x64xf32>
    %243 = arith.addf %239, %242 : vector<16x64xf32>
    %cst_113 = arith.constant 5.000000e-01 : f32
    %244 = vector.broadcast %cst_113 : f32 to vector<16x64xf32>
    %245 = arith.mulf %244, %243 : vector<16x64xf32>
    %cst_114 = arith.constant 4.471500e-02 : f32
    %246 = vector.broadcast %cst_114 : f32 to vector<16x64xf32>
    %247 = arith.mulf %246, %243 : vector<16x64xf32>
    %248 = arith.mulf %247, %243 : vector<16x64xf32>
    %249 = arith.mulf %248, %243 : vector<16x64xf32>
    %250 = arith.addf %243, %249 : vector<16x64xf32>
    %cst_115 = arith.constant 0.797884583 : f32
    %251 = vector.broadcast %cst_115 : f32 to vector<16x64xf32>
    %252 = arith.mulf %251, %250 : vector<16x64xf32>
    %253 = math.tanh %252 : vector<16x64xf32>
    %cst_116 = arith.constant 1.000000e+00 : f32
    %254 = vector.broadcast %cst_116 : f32 to vector<16x64xf32>
    %255 = arith.addf %254, %253 : vector<16x64xf32>
    %256 = arith.mulf %245, %255 : vector<16x64xf32>
    %257 = arith.truncf %256 : vector<16x64xf32> to vector<16x64xbf16>
    %c1_117 = arith.constant 1 : index
    %c0_118 = arith.constant 0 : index
    %c0_119 = arith.constant 0 : index
    %258 = vector.load %arg15[%c1_117, %c0_118, %c0_119] : memref<2x64x32xbf16, #tpu.memory_space<vmem>>, vector<1x64x32xbf16>
    %259 = vector.shape_cast %258 : vector<1x64x32xbf16> to vector<64x32xbf16>
    %cst_120 = arith.constant dense<0.000000e+00> : vector<16x32xf32>
    %260 = tpu.matmul %257, %259, %cst_120 {dimension_numbers = #tpu.dot_dimension_numbers<[1], [0], [0], [1], [0, 0, 1, 1], [], []>} : vector<16x64xbf16>, vector<64x32xbf16>, vector<16x32xf32> -> vector<16x32xf32>
    %c1_121 = arith.constant 1 : index
    %c0_122 = arith.constant 0 : index
    %c0_123 = arith.constant 0 : index
    %261 = vector.load %arg16[%c1_121, %c0_122, %c0_123] : memref<2x1x32xf32, #tpu.memory_space<vmem>>, vector<1x1x32xf32>
    %262 = vector.shape_cast %261 : vector<1x1x32xf32> to vector<1x32xf32>
    %263 = vector.broadcast %262 : vector<1x32xf32> to vector<16x32xf32>
    %264 = arith.addf %260, %263 : vector<16x32xf32>
    %265 = arith.addf %235, %264 : vector<16x32xf32>
    %c1_124 = arith.constant 1 : index
    %c0_125 = arith.constant 0 : index
    %c0_126 = arith.constant 0 : index
    %266 = vector.load %arg17[%c1_124, %c0_125, %c0_126] : memref<2x1x32xf32, #tpu.memory_space<vmem>>, vector<1x1x32xf32>
    %267 = vector.shape_cast %266 : vector<1x1x32xf32> to vector<1x32xf32>
    %c1_127 = arith.constant 1 : index
    %c0_128 = arith.constant 0 : index
    %c0_129 = arith.constant 0 : index
    %268 = vector.load %arg18[%c1_127, %c0_128, %c0_129] : memref<2x1x32xf32, #tpu.memory_space<vmem>>, vector<1x1x32xf32>
    %269 = vector.shape_cast %268 : vector<1x1x32xf32> to vector<1x32xf32>
    %cst_130 = arith.constant dense<0.000000e+00> : vector<16xf32>
    %270 = vector.multi_reduction <add>, %265, %cst_130 [1] : vector<16x32xf32> to vector<16xf32>
    %271 = vector.shape_cast %270 : vector<16xf32> to vector<16x1xf32>
    %cst_131 = arith.constant 3.200000e+01 : f32
    %272 = vector.broadcast %cst_131 : f32 to vector<16x1xf32>
    %273 = arith.divf %271, %272 : vector<16x1xf32>
    %274 = vector.broadcast %273 : vector<16x1xf32> to vector<16x32xf32>
    %275 = arith.subf %265, %274 : vector<16x32xf32>
    %276 = arith.mulf %275, %275 : vector<16x32xf32>
    %cst_132 = arith.constant dense<0.000000e+00> : vector<16xf32>
    %277 = vector.multi_reduction <add>, %276, %cst_132 [1] : vector<16x32xf32> to vector<16xf32>
    %278 = vector.shape_cast %277 : vector<16xf32> to vector<16x1xf32>
    %cst_133 = arith.constant 3.200000e+01 : f32
    %279 = vector.broadcast %cst_133 : f32 to vector<16x1xf32>
    %280 = arith.divf %278, %279 : vector<16x1xf32>
    %cst_134 = arith.constant 9.99999996E-13 : f32
    %281 = vector.broadcast %cst_134 : f32 to vector<16x1xf32>
    %282 = arith.addf %280, %281 : vector<16x1xf32>
    %283 = math.rsqrt %282 : vector<16x1xf32>
    %284 = vector.broadcast %283 : vector<16x1xf32> to vector<16x32xf32>
    %285 = arith.mulf %275, %284 : vector<16x32xf32>
    %286 = vector.broadcast %267 : vector<1x32xf32> to vector<16x32xf32>
    %287 = arith.mulf %285, %286 : vector<16x32xf32>
    %288 = vector.broadcast %269 : vector<1x32xf32> to vector<16x32xf32>
    %289 = arith.addf %287, %288 : vector<16x32xf32>
    %290 = vector.extract_strided_slice %289 {offsets = [0, 0], sizes = [1, 32], strides = [1, 1]} : vector<16x32xf32> to vector<1x32xf32>
    %291 = vector.extract_strided_slice %289 {offsets = [8, 0], sizes = [1, 32], strides = [1, 1]} : vector<16x32xf32> to vector<1x32xf32>
    %292 = tpu.concatenate %290, %291 in 0 : vector<1x32xf32>, vector<1x32xf32> -> vector<2x32xf32>
    %293 = arith.truncf %292 : vector<2x32xf32> to vector<2x32xbf16>
    %c0_135 = arith.constant 0 : index
    %c0_136 = arith.constant 0 : index
    %294 = vector.load %arg19[%c0_135, %c0_136] : memref<32x32xbf16, #tpu.memory_space<vmem>>, vector<32x32xbf16>
    %cst_137 = arith.constant dense<0.000000e+00> : vector<2x32xf32>
    %295 = tpu.matmul %293, %294, %cst_137 {dimension_numbers = #tpu.dot_dimension_numbers<[1], [0], [0], [1], [0, 0, 1, 1], [], []>} : vector<2x32xbf16>, vector<32x32xbf16>, vector<2x32xf32> -> vector<2x32xf32>
    %c0_138 = arith.constant 0 : index
    %c0_139 = arith.constant 0 : index
    %296 = vector.load %arg20[%c0_138, %c0_139] : memref<1x32xf32, #tpu.memory_space<vmem>>, vector<1x32xf32>
    %297 = vector.broadcast %296 : vector<1x32xf32> to vector<2x32xf32>
    %298 = arith.addf %295, %297 : vector<2x32xf32>
    %299 = math.tanh %298 : vector<2x32xf32>
    %300 = arith.truncf %299 : vector<2x32xf32> to vector<2x32xbf16>
    %c0_140 = arith.constant 0 : index
    %c0_141 = arith.constant 0 : index
    %301 = vector.load %arg21[%c0_140, %c0_141] : memref<32x2xbf16, #tpu.memory_space<vmem>>, vector<32x2xbf16>
    %cst_142 = arith.constant dense<0.000000e+00> : vector<2x2xf32>
    %302 = tpu.matmul %300, %301, %cst_142 {dimension_numbers = #tpu.dot_dimension_numbers<[1], [0], [0], [1], [0, 0, 1, 1], [], []>} : vector<2x32xbf16>, vector<32x2xbf16>, vector<2x2xf32> -> vector<2x2xf32>
    %c0_143 = arith.constant 0 : index
    %c0_144 = arith.constant 0 : index
    %303 = vector.load %arg22[%c0_143, %c0_144] : memref<1x2xf32, #tpu.memory_space<vmem>>, vector<1x2xf32>
    %304 = vector.broadcast %303 : vector<1x2xf32> to vector<2x2xf32>
    %305 = arith.addf %302, %304 : vector<2x2xf32>
    %c0_145 = arith.constant 0 : index
    %c0_146 = arith.constant 0 : index
    %306 = vector.load %arg23[%c0_145, %c0_146] : memref<2x2xf32, #tpu.memory_space<vmem>>, vector<2x2xf32>
    tpu.vector_store %arg23[%c0_145, %c0_146], %305 {strides = array<i32>} : memref<2x2xf32, #tpu.memory_space<vmem>>, vector<2x2xf32>,
    return
  }
}

</mosaic_0001>

<bundles_post_ra>
// kernel: tile.6
= control target key start
LH: loop header
LB: loop body
LE: loop exit
PB: predicated region body
PF: predicated region fallthrough
CT: control target
= control target key end

     0   :  { %s28_s0 = inlined_call_operand.vmem [shape: f32[2,8], index: 0, kind: input, shape index: {}]   ;;  %s29_s1 = inlined_call_operand.vmem [shape: f32[2,1,1,2,1,8], index: 1, kind: output, shape index: {}]  }
   0x1   :  { %v4_v0 = vld [vmem:[%s28_s0] sm:$0x3] }
   0x2   :  { %5 = vst [vmem:[%s29_s1] sm:$0x3] %v4_v0  ;;  %8 = vst [vmem:[%s29_s1 + $0x2] sm:$0x3] %v4_v0 }

// kernel: _lambda_.1
= control target key start
LH: loop header
LB: loop body
LE: loop exit
PB: predicated region body
PF: predicated region fallthrough
CT: control target
= control target key end

     0   :  { %s2551_s0 = inlined_call_operand.vmem [shape: s32[16,1], index: 0, kind: input, shape index: {}]   ;;  %s2552_s1 = inlined_call_operand.vmem [shape: s32[16,1], index: 1, kind: input, shape index: {}]   ;;  %s2553_s2 = inlined_call_operand.vmem [shape: f32[32,32], index: 2, kind: input, shape index: {}]   ;;  %s2554_s3 = inlined_call_operand.vmem [shape: bf16[102,32], index: 3, kind: input, shape index: {}]   ;;  %s2555_s4 = inlined_call_operand.vmem [shape: f32[16,32], index: 4, kind: input, shape index: {}]   ;;  %s2556_s5 = inlined_call_operand.vmem [shape: f32[1,32], index: 5, kind: input, shape index: {}]   ;;  %s2557_s6 = inlined_call_operand.vmem [shape: f32[1,32], index: 6, kind: input, shape index: {}]   ;;  %s2558_s7 = inlined_call_operand.vmem [shape: bf16[2,32,96], index: 7, kind: input, shape index: {}]   ;;  %s2559_s8 = inlined_call_operand.vmem [shape: f32[2,1,96], index: 8, kind: input, shape index: {}]   ;;  %s2560_s9 = inlined_call_operand.vmem [shape: bf16[2,32,32], index: 9, kind: input, shape index: {}]   ;;  %s2561_s10 = inlined_call_operand.vmem [shape: f32[2,1,32], index: 10, kind: input, shape index: {}]   ;;  %s2562_s11 = inlined_call_operand.vmem [shape: f32[2,1,32], index: 11, kind: input, shape index: {}]   ;;  %s2563_s12 = inlined_call_operand.vmem [shape: f32[2,1,32], index: 12, kind: input, shape index: {}]   ;;  %s2564_s13 = inlined_call_operand.vmem [shape: bf16[2,32,64], index: 13, kind: input, shape index: {}]   ;;  %s2565_s14 = inlined_call_operand.vmem [shape: f32[2,1,64], index: 14, kind: input, shape index: {}]   ;;  %s2566_s15 = inlined_call_operand.vmem [shape: bf16[2,64,32], index: 15, kind: input, shape index: {}]   ;;  %s2567_s16 = inlined_call_operand.vmem [shape: f32[2,1,32], index: 16, kind: input, shape index: {}]   ;;  %s2568_s17 = inlined_call_operand.vmem [shape: f32[2,1,32], index: 17, kind: input, shape index: {}]   ;;  %s2569_s18 = inlined_call_operand.vmem [shape: f32[2,1,32], index: 18, kind: input, shape index: {}]   ;;  %s2570_s19 = inlined_call_operand.vmem [shape: bf16[32,32], index: 19, kind: input, shape index: {}]   ;;  %s2571_s20 = inlined_call_operand.vmem [shape: f32[1,32], index: 20, kind: input, shape index: {}]   ;;  %s2572_s21 = inlined_call_operand.vmem [shape: bf16[32,2], index: 21, kind: input, shape index: {}]   ;;  %s2573_s22 = inlined_call_operand.vmem [shape: f32[1,2], index: 22, kind: input, shape index: {}]   ;;  %s2574_s23 = inlined_call_operand.hbm [shape: f32[2,2], index: 23, kind: output, shape index: {}]  }
   0x1   :  { %2581 = sst [smem:[#allocation5_spill]] %s2551_s0 }
   0x2   :  { %2582 = sst [smem:[#allocation6_spill]] %s2552_s1 }
   0x3   :  { %2583 = sst [smem:[#allocation7_spill]] %s2553_s2 }
   0x4   :  { %2584 = sst [smem:[#allocation8_spill]] %s2554_s3 }
   0x5   :  { %2585 = sst [smem:[#allocation9_spill]] %s2555_s4 }
   0x6   :  { %2586 = sst [smem:[#allocation10_spill]] %s2556_s5 }
   0x7   :  { %2587 = sst [smem:[#allocation11_spill]] %s2557_s6 }
   0x8   :  { %2588 = sst [smem:[#allocation12_spill]] %s2558_s7 }
   0x9   :  { %2589 = sst [smem:[#allocation13_spill]] %s2569_s18 }
   0xa   :  { %s2590_s24 = sld [smem:[#allocation5_spill]]  ;;  %s2591_s18 = sld [smem:[#allocation6_spill]]  ;;  %v2056_v2 = vmov 0   ;;  %v2057_v5 = vmov 0.0   ;;  %vm2058_vm0 = vmmov 0   ;;  %vm162_vm1 = vcmask 1042432  }
   0xb   :  { %1917 = vset.pattern.permute.xlu0 %v2056_v2  ;;  %1918 = vset.pattern.permute.xlu1 %v2056_v2  ;;  %s2592_s27 = sld [smem:[#allocation8_spill]] }
   0xc   :  { %1767 = vmatprep.subr.bf16.mxu0 %v2057_v5  ;;  %1785 = vmatprep.subr.bf16.mxu1 %v2057_v5 }
   0xd   :  { %1781 = vmatprep.mubr.msk.bf16.mxu0 %vm2058_vm0, %v2057_v5  ;;  %1789 = vmatprep.mubr.msk.bf16.mxu1 %vm2058_vm0, %v2057_v5 }
  0x10   :  { %v76_v0 = vld [vmem:[%s2590_s24] sm:$0xff]  ;;  %v79_v4 = vld [vmem:[%s2591_s18 + $0x8] sm:$0xff] }
  0x11   :  { %v78_v1 = vld [vmem:[%s2591_s18] sm:$0xff]  ;;  %83 = vperm.xlu0 %1917, %v76_v0   ;;  %v77_v7 = vld [vmem:[%s2590_s24 + $0x8] sm:$0xff]  ;;  %v91_v8 = vadd.s32 100, %v79_v4  ;;  %v1941_v10 = vld [vmem:[%s2592_s27 + $0x10] sm:$0xff]  }
  0x12   :  { %v90_v3 = vadd.s32 100, %v78_v1  ;;  %v1939_v6 = vld [vmem:[%s2592_s27] sm:$0xff]   ;;  %v1940_v9 = vld [vmem:[%s2592_s27 + $0x8] sm:$0xff]   ;;  %v1942_v11 = vld [vmem:[%s2592_s27 + $0x18] sm:$0xff]  }
  0x13   :  { %1768 = vmatpush3.bf16.msra.mxu0 %v1939_v6  ;;  %v1943_v12 = vld [vmem:[%s2592_s27 + $0x20] sm:$0xff]   ;;  %v1944_v13 = vld [vmem:[%s2592_s27 + $0x28] sm:$0xff]   ;;  %v1945_v14 = vld [vmem:[%s2592_s27 + $0x30] ss:$0 sps:$4 sm:$0x77]  }
  0x14   :  { %93 = vperm.xlu1 %1918, %v90_v3   ;;  %1769 = vmatprep.subr.bf16.mxu0 %v2057_v5  ;;  %v164_v15 = vsel %vm162_vm1, %v1945_v14, 0 }
  0x15   :  { %86 = vperm.xlu0 %1917, %v77_v7  }
  0x17   :  { %1770 = vmatpush3.bf16.msra.mxu0 %v1940_v9 }
  0x18   :  { %96 = vperm.xlu1 %1918, %v91_v8   ;;  %1771 = vmatprep.subr.bf16.mxu0 %v2057_v5 }
  0x1b   :  { %1772 = vmatpush3.bf16.msra.mxu0 %v1941_v10 }
  0x1c   :  { %1773 = vmatprep.subr.bf16.mxu0 %v2057_v5 }
  0x1f   :  { %1774 = vmatpush3.bf16.msra.mxu0 %v1942_v11 }
  0x20   :  { %1775 = vmatprep.subr.bf16.mxu0 %v2057_v5 }
  0x23   :  { %1776 = vmatpush3.bf16.msra.mxu0 %v1943_v12 }
  0x24   :  { %1777 = vmatprep.subr.bf16.mxu0 %v2057_v5 }
  0x27   :  { %1778 = vmatpush3.bf16.msra.mxu0 %v1944_v13 }
  0x28   :  { %1779 = vmatprep.subr.bf16.mxu0 %v2057_v5 }
  0x29   :  { %28 = vsyncpa [#allocation3], 0  ;;  %v80_v16 = vlaneseq  ;;  %vm158_vm8 = vcmask 834560   ;;  %s2593_s7 = sld [smem:[#allocation9_spill]]  ;;  %vm209_vm9 = vcmask 261120   ;;  %s2594_s3 = sld [smem:[#allocation12_spill]] }
  0x2a   :  { %s2595_s24 = sld [smem:[#allocation10_spill]]  ;;  %s2596_s1 = sld [smem:[#allocation11_spill]]  ;;  %v1621_v63 = vld [vmem:[%s2559_s8] ss:$0 sm:$0xff]  ;;  %vm341_vm10 = vcmask 130048   ;;  %vm760_vm11 = vcmask 523264  }
  0x2b   :  { %1780 = vmatpush3.bf16.msra.mxu0 %v164_v15  ;;  %v81_v17 = vand.u32 127, %v80_v16  ;;  %s2059_s6 = smov 112   ;;  %s2060_s27 = smov 96   ;;  %vm1458_vm12 = vcmask 1040384   ;;  %vm1595_vm13 = vcmask 9216  }
  0x2c   :  { %1809 = vmatprep.subr.bf16.mxu0 %v2057_v5  ;;  %s2597_s29 = sld [smem:[#allocation7_spill]]  ;;  %s2061_s5 = smov 64  }
  0x2d   :  { %s2062_s28 = smov 16  }
  0x2f   :  { %v118_v25 = vld [vmem:[%s2593_s7] sm:$0xff]  ;;  %v1947_v45 = vld [vmem:[%s2594_s3 + $0x8] sm:$0xff]  }
  0x30   :  { %v1946_v44 = vld [vmem:[%s2594_s3] sm:$0xff]  }
  0x31   :  { %1786 = vmatpush3.bf16.msra.mxu1 %v1946_v44  ;;  %v1619_v54 = vld [vmem:[%s2595_s24] ss:$0 sm:$0xff] }
  0x32   :  { %1787 = vmatprep.subr.bf16.mxu1 %v2057_v5  ;;  %v1620_v58 = vld [vmem:[%s2596_s1] ss:$0 sm:$0xff]  ;;  %s2598_s1 = sld [smem:[#allocation13_spill]] }
  0x35   :  { %1788 = vmatpush3.bf16.msra.mxu1 %v1947_v45 }
  0x90   :  { %v84_v18 = vpop.permute.xlu0 %83 }
  0x91   :  { %vm88_vm2 = vcmp.eq.s32.totalorder %v84_v18, %v81_v17 }
  0x93   :  { %v94_v19 = vpop.permute.xlu1 %93 }
  0x94   :  { %vm98_vm3 = vcmp.eq.s32.totalorder %v94_v19, %v81_v17  ;;  %v87_v20 = vpop.permute.xlu0 %86 }
  0x95   :  { %vm100_vm4 = vmor %vm88_vm2, %vm98_vm3  ;;  %vm89_vm5 = vcmp.eq.s32.totalorder %v87_v20, %v81_v17  ;;  %v2285_v20 = vld [vmem:[%s2597_s29 + $0x18] sm:$0xff] }
  0x96   :  { %v102_v22 = vsel %vm100_vm4, 1.0, %v2057_v5 }
  0x97   :  { %v97_v21 = vpop.permute.xlu1 %96 }
  0x98   :  { %vm99_vm6 = vcmp.eq.s32.totalorder %v97_v21, %v81_v17  ;;  %v2280_v17 = vld [vmem:[%s2597_s29] sm:$0xff]  ;;  %v2290_v21 = vld [vmem:[%s2597_s29 + $0x8] sm:$0xff] }
  0x99   :  { %vm101_vm7 = vmor %vm89_vm5, %vm99_vm6 }
  0x9a   :  { %v103_v23 = vsel %vm101_vm7, 1.0, %v2057_v5 }
  0x9b   :  { %v104_v24 = vpack.c.bf16 %v103_v23, %v102_v22 }
  0x9d   :  { %1782 = vmatmul.mubr.msk.bf16.vlgmr.msra.gmra.mrb[0].mxu0 %vm158_vm8, %v104_v24  ;;  %v2296_v24 = vld [vmem:[%s2597_s29 + $0x10] sm:$0xff] }
  0x9e   :  { %1813 = vmatprep.mubr.msk.bf16.mxu0 %vm2058_vm0, %v2057_v5 }
 0x170   :  { %v200_v26 = vpop.f32.mrb[0].mxu0 }
 0x171   :  { %v201_v27 = vadd.f32 %v200_v26, %v118_v25  ;;  %v1783_v28 = vpop.f32.mrb[1].mxu0 }
 0x172   :  { %v203_v29 = vpop.f32.mrb[2].mxu0 }
 0x173   :  { %v204_v30 = vadd.f32 %v203_v29, %v118_v25  ;;  %v1784_v31 = vpop.f32.mrb[3].mxu0  ;;  %v210_v32 = vsel %vm209_vm9, %v201_v27, 0.0 }
 0x174   :  { %211 = vadd.xlane.f32.xlu0 %v210_v32 }
 0x175   :  { %v213_v33 = vsel %vm209_vm9, %v204_v30, 0.0 }
 0x176   :  { %214 = vadd.xlane.f32.xlu1 %v213_v33 }
 0x201   :  { %v212_v34 = vpop.xlane.xlu0 %211 }
 0x202   :  { %v217_v35 = vmul.f32 0.03125, %v212_v34 }
 0x203   :  { %v215_v36 = vpop.xlane.xlu1 %214 }
 0x204   :  { %v219_v37 = vsub.f32 %v201_v27, %v217_v35  ;;  %v218_v38 = vmul.f32 0.03125, %v215_v36 }
 0x206   :  { %v220_v39 = vsub.f32 %v204_v30, %v218_v38  ;;  %v221_v40 = vmul.f32 %v219_v37, %v219_v37 }
 0x208   :  { %v223_v41 = vsel %vm209_vm9, %v221_v40, 0.0  ;;  %v222_v42 = vmul.f32 %v220_v39, %v220_v39 }
 0x209   :  { %224 = vadd.xlane.f32.xlu0 %v223_v41 }
 0x20a   :  { %v226_v43 = vsel %vm209_vm9, %v222_v42, 0.0 }
 0x20d   :  { %227 = vadd.xlane.f32.xlu0 %v226_v43 }
 0x296   :  { %v225_v46 = vpop.xlane.xlu0 %224 }
 0x297   :  { %v229_v47 = vmul.f32 0.03125, %v225_v46 }
 0x299   :  { %v231_v48 = vadd.f32 1e-12, %v229_v47 }
 0x29a   :  { %v228_v49 = vpop.xlane.xlu0 %227 }
 0x29b   :  { %1970 = vrsqrt.f32 %v231_v48  ;;  %v230_v50 = vmul.f32 0.03125, %v228_v49 }
 0x29d   :  { %v232_v51 = vadd.f32 1e-12, %v230_v50 }
 0x29f   :  { %1972 = vrsqrt.f32 %v232_v51 }
 0x2a5   :  { %v1971_v52 = vpop.eup %1970 }
 0x2a6   :  { %v235_v53 = vmul.f32 %v1971_v52, %v219_v37 }
 0x2a8   :  { %v243_v57 = vmul.f32 %v1619_v54, %v235_v53 }
 0x2a9   :  { %v1973_v55 = vpop.eup %1972 }
 0x2aa   :  { %v236_v56 = vmul.f32 %v1973_v55, %v220_v39  ;;  %v2254_v60 = vadd.f32 %v1620_v58, %v243_v57 }
 0x2ac   :  { %v244_v59 = vmul.f32 %v1619_v54, %v236_v56 }
 0x2ae   :  { %v2256_v61 = vadd.f32 %v1620_v58, %v244_v59 }
 0x2b0   :  { %v257_v62 = vpack.c.bf16 %v2256_v61, %v2254_v60 }
 0x2b2   :  { %1790 = vmatmul.mubr.msk.bf16.vlgmr.msra.gmra.mrb[0].mxu1 %vm209_vm9, %v257_v62 }
 0x385   :  { %v318_v0 = vpop.f32.mrb[0].mxu1 }
 0x386   :  { %v1791_v1 = vpop.f32.mrb[1].mxu1  ;;  %v319_v3 = vadd.f32 %v1621_v63, %v318_v0 }
 0x387   :  { %v321_v2 = vpop.f32.mrb[2].mxu1 }
 0x388   :  { %v322_v4 = vadd.f32 %v1621_v63, %v321_v2  ;;  %v1792_v6 = vpop.f32.mrb[3].mxu1 }
 0x38a   :  { %v1919_v7 = vpack.i.bf16 %v322_v4, %v319_v3  ;;  %v2264_v8 = vpack.c.bf16 %v322_v4, %v319_v3 }
 0x38c   :  { %1920 = vrot.lane.b32.xlu1 %v1919_v7, %s2059_s6  ;;  %337 = vrot.lane.b32.xlu0 %v2264_v8, %s2060_s27 }
 0x38d   :  { %1797 = vmatprep.mubr.msk.bf16.mxu1 %vm341_vm10, %v2264_v8 }
 0x3fe   :  { %v1921_v9 = vpop.permute.xlu1 %1920  ;;  %v338_v10 = vpop.permute.xlu0 %337 }
 0x3ff   :  { %v1923_v11 = vunpack.i.h.bf16 %v1921_v9  ;;  %v1922_v12 = vunpack.i.l.bf16 %v1921_v9  ;;  %v349_v13 = vsel %vm341_vm10, %v338_v10, 0  ;;  %1905 = vmatprep.subr.msk.bf16.mxu1 %vm341_vm10, %v338_v10  ;;  %v1949_v9 = vld [vmem:[%s2560_s9 + $0x8] sm:$0xff]  }
 0x400   :  { %1794 = vmatpush3.bf16.xpose.msra.mxu1 %v349_v13 }
 0x401   :  { %v334_v14 = vpack.c.bf16 %v1923_v11, %v1922_v12 }
 0x403   :  { %339 = vrot.lane.b32.xlu1 %v334_v14, %s2060_s27 }
 0x475   :  { %v340_v15 = vpop.permute.xlu1 %339 }
 0x476   :  { %v352_v16 = vsel %vm341_vm10, %v340_v15, 0  ;;  %1906 = vmatprep.subr.msk.bf16.mxu1 %vm341_vm10, %v340_v15 }
 0x477   :  { %1796 = vmatpush3.bf16.xpose.msra.mxu1 %v352_v16 }
 0x47e   :  { %1798 = vmatmul.mubr.msk.bf16.vlgmr.msra.gmra.mrb[4].mxu1 %vm341_vm10, %v334_v14 }
 0x551   :  { %v1799_v18 = vpop.f32.mrb[4].mxu1 }
 0x552   :  { %v388_v19 = vpop.f32.mrb[5].mxu1  ;;  %v397_v29 = vadd.f32 %v1799_v18, %v2296_v24 }
 0x553   :  { %v389_v22 = vadd.f32 %v388_v19, %v2280_v17  ;;  %v1800_v23 = vpop.f32.mrb[6].mxu1 }
 0x554   :  { %v391_v25 = vpop.f32.mrb[7].mxu1  ;;  %v400_v26 = vadd.f32 %v1800_v23, %v2285_v20  ;;  %v409_v32 = vsel %vm209_vm9, %v397_v29, -inf }
 0x555   :  { %v392_v27 = vadd.f32 %v391_v25, %v2290_v21  ;;  %v403_v28 = vsel %vm209_vm9, %v389_v22, -inf  ;;  %v1629_v25 = vld [vmem:[%s2561_s10] ss:$0 sm:$0xff] }
 0x556   :  { %404 = vmax.xlane.f32.xlu1 %v403_v28  ;;  %v412_v31 = vsel %vm209_vm9, %v400_v26, -inf }
 0x557   :  { %v406_v30 = vsel %vm209_vm9, %v392_v27, -inf }
 0x558   :  { %407 = vmax.xlane.f32.xlu0 %v406_v30 }
 0x55a   :  { %413 = vmax.xlane.f32.xlu1 %v412_v31 }
 0x55c   :  { %410 = vmax.xlane.f32.xlu0 %v409_v32 }
 0x5e3   :  { %v405_v33 = vpop.xlane.xlu1 %404 }
 0x5e4   :  { %v415_v37 = vsub.f32 %v389_v22, %v405_v33 }
 0x5e5   :  { %v408_v34 = vpop.xlane.xlu0 %407 }
 0x5e6   :  { %v416_v35 = vsub.f32 %v392_v27, %v408_v34  ;;  %v419_v43 = vmul.f32 1.442695, %v415_v37 }
 0x5e7   :  { %v414_v36 = vpop.xlane.xlu1 %413 }
 0x5e8   :  { %v418_v38 = vsub.f32 %v400_v26, %v414_v36  ;;  %v421_v39 = vmul.f32 1.442695, %v416_v35 }
 0x5e9   :  { %v411_v40 = vpop.xlane.xlu0 %410 }
 0x5ea   :  { %v425_v41 = vmul.f32 1.442695, %v418_v38  ;;  %v417_v42 = vsub.f32 %v397_v29, %v411_v40 }
 0x5ec   :  { %1974 = vpow2.f32 %v425_v41  ;;  %v423_v44 = vmul.f32 1.442695, %v417_v42 }
 0x5ed   :  { %1976 = vpow2.f32 %v421_v39 }
 0x5ee   :  { %1978 = vpow2.f32 %v423_v44 }
 0x5ef   :  { %1980 = vpow2.f32 %v419_v43 }
 0x5f6   :  { %v1975_v45 = vpop.eup %1974 }
 0x5f7   :  { %v1977_v46 = vpop.eup %1976  ;;  %v436_v47 = vsel %vm209_vm9, %v1975_v45, 0.0 }
 0x5f8   :  { %v1979_v48 = vpop.eup %1978  ;;  %437 = vadd.xlane.f32.xlu1 %v436_v47  ;;  %v430_v51 = vsel %vm209_vm9, %v1977_v46, 0.0 }
 0x5f9   :  { %v433_v49 = vsel %vm209_vm9, %v1979_v48, 0.0  ;;  %v1981_v50 = vpop.eup %1980 }
 0x5fa   :  { %434 = vadd.xlane.f32.xlu0 %v433_v49  ;;  %v427_v52 = vsel %vm209_vm9, %v1981_v50, 0.0 }
 0x5fc   :  { %431 = vadd.xlane.f32.xlu1 %v430_v51 }
 0x5fe   :  { %428 = vadd.xlane.f32.xlu0 %v427_v52 }
 0x60d   :  { %451 = vrot.lane.b32.xlu1 %v334_v14, %s2061_s5 }
 0x614   :  { %449 = vrot.lane.b32.xlu0 %v2264_v8, %s2061_s5  ;;  %v1948_v8 = vld [vmem:[%s2560_s9] sm:$0xff]  }
 0x615   :  { %1810 = vmatpush3.bf16.msra.mxu0 %v1948_v8 }
 0x616   :  { %1811 = vmatprep.subr.bf16.mxu0 %v2057_v5 }
 0x619   :  { %1812 = vmatpush3.bf16.msra.mxu0 %v1949_v9 }
 0x61a   :  { %1825 = vmatprep.subr.bf16.mxu0 %v2057_v5 }
 0x685   :  { %v438_v53 = vpop.xlane.xlu1 %437 }
 0x687   :  { %v435_v54 = vpop.xlane.xlu0 %434 }
 0x688   :  { %1982 = vrcp.f32 %v435_v54  ;;  %v1633_v54 = vld [vmem:[%s2562_s11] ss:$0 sm:$0xff] }
 0x689   :  { %v432_v55 = vpop.xlane.xlu1 %431 }
 0x68a   :  { %1984 = vrcp.f32 %v432_v55 }
 0x68b   :  { %1986 = vrcp.f32 %v438_v53  ;;  %v429_v56 = vpop.xlane.xlu0 %428 }
 0x68c   :  { %1988 = vrcp.f32 %v429_v56 }
 0x68d   :  { %v452_v58 = vpop.permute.xlu1 %451 }
 0x68f   :  { %v450_v57 = vpop.permute.xlu0 %449 }
 0x690   :  { %1801 = vmatprep.subr.bf16.mxu1 %v450_v57 }
 0x691   :  { %1802 = vmatpush3.bf16.msra.mxu1 %v450_v57 }
 0x692   :  { %1803 = vmatprep.subr.bf16.mxu1 %v452_v58  ;;  %v1983_v59 = vpop.eup %1982 }
 0x693   :  { %v445_v1 = vmul.f32 %v1983_v59, %v1979_v48 }
 0x694   :  { %v1985_v62 = vpop.eup %1984 }
 0x695   :  { %v1987_v63 = vpop.eup %1986  ;;  %1804 = vmatpush3.bf16.msra.mxu1 %v452_v58  ;;  %v444_v3 = vmul.f32 %v1985_v62, %v1977_v46  ;;  %v1634_v58 = vld [vmem:[%s2563_s12] ss:$0 sm:$0xff] }
 0x696   :  { %v1989_v0 = vpop.eup %1988  ;;  %1817 = vmatprep.subr.bf16.mxu1 %v2057_v5  ;;  %v446_v4 = vmul.f32 %v1987_v63, %v1975_v45  ;;  %v1951_v45 = vld [vmem:[%s2564_s13 + $0x8] sm:$0xff]  }
 0x697   :  { %v443_v2 = vmul.f32 %v1989_v0, %v1981_v50 }
 0x698   :  { %v448_v7 = vpack.c.bf16 %v446_v4, %v445_v1  ;;  %v1952_v1 = vld [vmem:[%s2566_s15] sm:$0xff]   ;;  %v1955_v4 = vld [vmem:[%s2566_s15 + $0x18] sm:$0xff]  }
 0x699   :  { %v447_v6 = vpack.c.bf16 %v444_v3, %v443_v2  ;;  %v1953_v2 = vld [vmem:[%s2566_s15 + $0x8] sm:$0xff]   ;;  %v1954_v3 = vld [vmem:[%s2566_s15 + $0x10] sm:$0xff]  }
 0x69b   :  { %1805 = vmatprep.mubr.msk.bf16.mxu1 %vm209_vm9, %v447_v6  ;;  %v1635_v6 = vld [vmem:[%s2565_s14] ss:$0 sm:$0xff] }
 0x69c   :  { %1806 = vmatmul.mubr.msk.bf16.vlgmr.msra.gmra.mrb[8].mxu1 %vm209_vm9, %v448_v7 }
 0x69d   :  { %1821 = vmatprep.mubr.msk.bf16.mxu1 %vm2058_vm0, %v2057_v5 }
 0x76f   :  { %v1807_v10 = vpop.f32.mrb[8].mxu1 }
 0x770   :  { %v495_v11 = vpop.f32.mrb[9].mxu1 }
 0x771   :  { %v1808_v12 = vpop.f32.mrb[10].mxu1 }
 0x772   :  { %v1924_v13 = vpack.i.bf16 %v1808_v12, %v1807_v10  ;;  %v498_v14 = vpop.f32.mrb[11].mxu1 }
 0x774   :  { %1925 = vrot.lane.b32.xlu1 %v1924_v13, %s2062_s28 }
 0x7e6   :  { %v1926_v15 = vpop.permute.xlu1 %1925 }
 0x7e7   :  { %v1928_v16 = vunpack.i.h.bf16 %v1926_v15  ;;  %v1927_v18 = vunpack.i.l.bf16 %v1926_v15 }
 0x7e9   :  { %v518_v19 = vsel %vm341_vm10, %v495_v11, %v1927_v18  ;;  %v519_v22 = vsel %vm341_vm10, %v498_v14, %v1928_v16 }
 0x7ea   :  { %v520_v23 = vpack.c.bf16 %v519_v22, %v518_v19 }
 0x7ec   :  { %1814 = vmatmul.mubr.msk.bf16.vlgmr.msra.gmra.mrb[4].mxu0 %vm209_vm9, %v520_v23 }
 0x7ed   :  { %1833 = vmatprep.mubr.msk.bf16.mxu0 %vm2058_vm0, %v2057_v5  ;;  %1826 = vmatpush3.bf16.msra.mxu0 %v1952_v1 }
 0x7ee   :  { %1827 = vmatprep.subr.bf16.mxu0 %v2057_v5 }
 0x7f1   :  { %1828 = vmatpush3.bf16.msra.mxu0 %v1953_v2  ;;  %v1645_v2 = vld [vmem:[%s2568_s17] ss:$0 sm:$0xff] }
 0x7f2   :  { %1829 = vmatprep.subr.bf16.mxu0 %v2057_v5 }
 0x7f5   :  { %1830 = vmatpush3.bf16.msra.mxu0 %v1954_v3 }
 0x7f6   :  { %1831 = vmatprep.subr.bf16.mxu0 %v2057_v5 }
 0x7f9   :  { %1832 = vmatpush3.bf16.msra.mxu0 %v1955_v4 }
 0x8bf   :  { %v581_v26 = vpop.f32.mrb[4].mxu0 }
 0x8c0   :  { %v582_v27 = vadd.f32 %v1629_v25, %v581_v26  ;;  %v1815_v28 = vpop.f32.mrb[5].mxu0 }
 0x8c1   :  { %v584_v29 = vpop.f32.mrb[6].mxu0 }
 0x8c2   :  { %v585_v30 = vadd.f32 %v1629_v25, %v584_v29  ;;  %v1816_v31 = vpop.f32.mrb[7].mxu0  ;;  %v588_v32 = vadd.f32 %v582_v27, %v2254_v60 }
 0x8c4   :  { %v592_v33 = vsel %vm209_vm9, %v588_v32, 0.0  ;;  %v589_v34 = vadd.f32 %v585_v30, %v2256_v61  ;;  %v1950_v61 = vld [vmem:[%s2564_s13] sm:$0xff]  }
 0x8c5   :  { %593 = vadd.xlane.f32.xlu0 %v592_v33  ;;  %1818 = vmatpush3.bf16.msra.mxu1 %v1950_v61 }
 0x8c6   :  { %v595_v35 = vsel %vm209_vm9, %v589_v34, 0.0  ;;  %1819 = vmatprep.subr.bf16.mxu1 %v2057_v5 }
 0x8c7   :  { %596 = vadd.xlane.f32.xlu1 %v595_v35 }
 0x8c9   :  { %1820 = vmatpush3.bf16.msra.mxu1 %v1951_v45 }
 0x8ca   :  { %1837 = vmatprep.subr.bf16.mxu1 %v2057_v5 }
 0x952   :  { %v594_v36 = vpop.xlane.xlu0 %593 }
 0x953   :  { %v598_v37 = vmul.f32 0.03125, %v594_v36  ;;  %v1639_v36 = vld [vmem:[%s2567_s16] ss:$0 sm:$0xff] }
 0x954   :  { %v597_v38 = vpop.xlane.xlu1 %596 }
 0x955   :  { %v600_v39 = vsub.f32 %v588_v32, %v598_v37  ;;  %v599_v40 = vmul.f32 0.03125, %v597_v38 }
 0x957   :  { %v601_v41 = vsub.f32 %v589_v34, %v599_v40  ;;  %v602_v42 = vmul.f32 %v600_v39, %v600_v39 }
 0x959   :  { %v604_v43 = vsel %vm209_vm9, %v602_v42, 0.0  ;;  %v603_v44 = vmul.f32 %v601_v41, %v601_v41 }
 0x95a   :  { %605 = vadd.xlane.f32.xlu0 %v604_v43 }
 0x95b   :  { %v607_v60 = vsel %vm209_vm9, %v603_v44, 0.0 }
 0x95e   :  { %608 = vadd.xlane.f32.xlu0 %v607_v60 }
 0x9e7   :  { %v606_v46 = vpop.xlane.xlu0 %605 }
 0x9e8   :  { %v610_v47 = vmul.f32 0.03125, %v606_v46 }
 0x9ea   :  { %v612_v48 = vadd.f32 1e-12, %v610_v47 }
 0x9eb   :  { %v609_v49 = vpop.xlane.xlu0 %608 }
 0x9ec   :  { %1990 = vrsqrt.f32 %v612_v48  ;;  %v611_v50 = vmul.f32 0.03125, %v609_v49 }
 0x9ee   :  { %v613_v51 = vadd.f32 1e-12, %v611_v50 }
 0x9f0   :  { %1992 = vrsqrt.f32 %v613_v51 }
 0x9f6   :  { %v1991_v52 = vpop.eup %1990 }
 0x9f7   :  { %v616_v53 = vmul.f32 %v1991_v52, %v600_v39 }
 0x9f9   :  { %v624_v56 = vmul.f32 %v1633_v54, %v616_v53 }
 0x9fa   :  { %v1993_v55 = vpop.eup %1992 }
 0x9fb   :  { %v617_v57 = vmul.f32 %v1993_v55, %v601_v41  ;;  %v632_v62 = vadd.f32 %v1634_v58, %v624_v56  ;;  %v1956_v55 = vld [vmem:[%s2594_s3 + $0x10] sm:$0xff]   ;;  %v1957_v56 = vld [vmem:[%s2594_s3 + $0x18] sm:$0xff]  }
 0x9fd   :  { %v625_v59 = vmul.f32 %v1633_v54, %v617_v57 }
 0x9ff   :  { %v633_v63 = vadd.f32 %v1634_v58, %v625_v59 }
 0xa01   :  { %v634_v0 = vpack.c.bf16 %v633_v63, %v632_v62 }
 0xa03   :  { %1822 = vmatmul.mubr.msk.bf16.vlgmr.msra.gmra.mrb[12].mxu1 %vm209_vm9, %v634_v0 }
 0xa04   :  { %1841 = vmatprep.mubr.msk.bf16.mxu1 %vm2058_vm0, %v2057_v5  ;;  %1838 = vmatpush3.bf16.msra.mxu1 %v1956_v55 }
 0xa05   :  { %1839 = vmatprep.subr.bf16.mxu1 %v2057_v5 }
 0xa08   :  { %1840 = vmatpush3.bf16.msra.mxu1 %v1957_v56 }
 0xad6   :  { %v695_v7 = vpop.f32.mrb[12].mxu1 }
 0xad7   :  { %v696_v8 = vadd.f32 %v1635_v6, %v695_v7  ;;  %v1823_v9 = vpop.f32.mrb[13].mxu1 }
 0xad8   :  { %v698_v10 = vpop.f32.mrb[14].mxu1 }
 0xad9   :  { %v704_v11 = vmul.f32 0.044715, %v696_v8  ;;  %v699_v12 = vadd.f32 %v1635_v6, %v698_v10  ;;  %v1824_v13 = vpop.f32.mrb[15].mxu1  ;;  %v702_v30 = vmul.f32 0.5, %v696_v8 }
 0xada   :  { %v1652_v13 = vld [vmem:[%s2559_s8 + $0x1] ss:$0 sm:$0xff] }
 0xadb   :  { %v706_v14 = vmul.f32 %v704_v11, %v696_v8  ;;  %v705_v15 = vmul.f32 0.044715, %v699_v12  ;;  %v703_v31 = vmul.f32 0.5, %v699_v12 }
 0xadd   :  { %v708_v16 = vmul.f32 %v706_v14, %v696_v8  ;;  %v707_v18 = vmul.f32 %v705_v15, %v699_v12 }
 0xadf   :  { %v710_v19 = vadd.f32 %v708_v16, %v696_v8  ;;  %v709_v22 = vmul.f32 %v707_v18, %v699_v12  ;;  %v1646_v8 = vld [vmem:[%s2598_s1] ss:$0 sm:$0xff] }
 0xae1   :  { %v712_v23 = vmul.f32 0.7978846, %v710_v19  ;;  %v711_v25 = vadd.f32 %v709_v22, %v699_v12 }
 0xae3   :  { %1994 = vtanh.f32 %v712_v23  ;;  %v713_v26 = vmul.f32 0.7978846, %v711_v25 }
 0xae5   :  { %1996 = vtanh.f32 %v713_v26 }
 0xaed   :  { %v1995_v27 = vpop.eup %1994 }
 0xaee   :  { %v716_v28 = vadd.f32 1.0, %v1995_v27 }
 0xaef   :  { %v1997_v29 = vpop.eup %1996 }
 0xaf0   :  { %v717_v32 = vadd.f32 1.0, %v1997_v29  ;;  %v718_v33 = vmul.f32 %v716_v28, %v702_v30 }
 0xaf2   :  { %v719_v34 = vmul.f32 %v717_v32, %v703_v31 }
 0xaf4   :  { %v720_v35 = vpack.c.bf16 %v719_v34, %v718_v33 }
 0xaf6   :  { %1834 = vmatmul.mubr.msk.bf16.vlgmr.msra.gmra.mrb[8].mxu0 %vm760_vm11, %v720_v35 }
 0xbc9   :  { %v798_v37 = vpop.f32.mrb[8].mxu0 }
 0xbca   :  { %v799_v38 = vadd.f32 %v1639_v36, %v798_v37  ;;  %v1835_v39 = vpop.f32.mrb[9].mxu0 }
 0xbcb   :  { %v801_v40 = vpop.f32.mrb[10].mxu0 }
 0xbcc   :  { %v802_v41 = vadd.f32 %v1639_v36, %v801_v40  ;;  %v1836_v42 = vpop.f32.mrb[11].mxu0  ;;  %v805_v43 = vadd.f32 %v799_v38, %v632_v62 }
 0xbce   :  { %v809_v44 = vsel %vm209_vm9, %v805_v43, 0.0  ;;  %v806_v60 = vadd.f32 %v802_v41, %v633_v63 }
 0xbcf   :  { %810 = vadd.xlane.f32.xlu1 %v809_v44 }
 0xbd0   :  { %v812_v61 = vsel %vm209_vm9, %v806_v60, 0.0 }
 0xbd1   :  { %813 = vadd.xlane.f32.xlu0 %v812_v61 }
 0xc5c   :  { %v811_v45 = vpop.xlane.xlu1 %810 }
 0xc5d   :  { %v815_v46 = vmul.f32 0.03125, %v811_v45 }
 0xc5e   :  { %v814_v47 = vpop.xlane.xlu0 %813 }
 0xc5f   :  { %v817_v48 = vsub.f32 %v805_v43, %v815_v46  ;;  %v816_v49 = vmul.f32 0.03125, %v814_v47 }
 0xc61   :  { %v818_v50 = vsub.f32 %v806_v60, %v816_v49  ;;  %v819_v51 = vmul.f32 %v817_v48, %v817_v48 }
 0xc63   :  { %v821_v52 = vsel %vm209_vm9, %v819_v51, 0.0  ;;  %v820_v53 = vmul.f32 %v818_v50, %v818_v50 }
 0xc64   :  { %822 = vadd.xlane.f32.xlu1 %v821_v52 }
 0xc65   :  { %v824_v54 = vsel %vm209_vm9, %v820_v53, 0.0 }
 0xc66   :  { %825 = vadd.xlane.f32.xlu0 %v824_v54 }
 0xcf1   :  { %v823_v57 = vpop.xlane.xlu1 %822 }
 0xcf2   :  { %v827_v58 = vmul.f32 0.03125, %v823_v57 }
 0xcf3   :  { %v826_v59 = vpop.xlane.xlu0 %825 }
 0xcf4   :  { %v829_v62 = vadd.f32 1e-12, %v827_v58  ;;  %v828_v63 = vmul.f32 0.03125, %v826_v59 }
 0xcf6   :  { %1998 = vrsqrt.f32 %v829_v62  ;;  %v830_v0 = vadd.f32 1e-12, %v828_v63 }
 0xcf8   :  { %2000 = vrsqrt.f32 %v830_v0 }
 0xd00   :  { %v1999_v1 = vpop.eup %1998 }
 0xd01   :  { %v833_v3 = vmul.f32 %v1999_v1, %v817_v48 }
 0xd02   :  { %v2001_v4 = vpop.eup %2000 }
 0xd03   :  { %v841_v6 = vmul.f32 %v1645_v2, %v833_v3  ;;  %v834_v7 = vmul.f32 %v2001_v4, %v818_v50 }
 0xd05   :  { %v842_v9 = vmul.f32 %v1645_v2, %v834_v7  ;;  %v2396_v10 = vadd.f32 %v1646_v8, %v841_v6 }
 0xd07   :  { %v2398_v11 = vadd.f32 %v1646_v8, %v842_v9 }
 0xd09   :  { %v851_v12 = vpack.c.bf16 %v2398_v11, %v2396_v10 }
 0xd0b   :  { %1842 = vmatmul.mubr.msk.bf16.vlgmr.msra.gmra.mrb[16].mxu1 %vm209_vm9, %v851_v12 }
 0xdde   :  { %v914_v14 = vpop.f32.mrb[16].mxu1 }
 0xddf   :  { %v1843_v15 = vpop.f32.mrb[17].mxu1  ;;  %v915_v18 = vadd.f32 %v1652_v13, %v914_v14 }
 0xde0   :  { %v917_v16 = vpop.f32.mrb[18].mxu1 }
 0xde1   :  { %v918_v19 = vadd.f32 %v1652_v13, %v917_v16  ;;  %v1844_v22 = vpop.f32.mrb[19].mxu1 }
 0xde3   :  { %v1929_v23 = vpack.i.bf16 %v918_v19, %v915_v18  ;;  %v2406_v25 = vpack.c.bf16 %v918_v19, %v915_v18  ;;  %v1958_v18 = vld [vmem:[%s2560_s9 + $0x10] sm:$0xff]   ;;  %v1959_v19 = vld [vmem:[%s2560_s9 + $0x18] sm:$0xff]  }
 0xde5   :  { %1930 = vrot.lane.b32.xlu1 %v1929_v23, %s2059_s6  ;;  %933 = vrot.lane.b32.xlu0 %v2406_v25, %s2060_s27 }
 0xde6   :  { %1849 = vmatprep.mubr.msk.bf16.mxu1 %vm341_vm10, %v2406_v25 }
 0xe57   :  { %v1931_v26 = vpop.permute.xlu1 %1930  ;;  %v934_v27 = vpop.permute.xlu0 %933 }
 0xe58   :  { %v1933_v28 = vunpack.i.h.bf16 %v1931_v26  ;;  %v1932_v29 = vunpack.i.l.bf16 %v1931_v26  ;;  %v944_v30 = vsel %vm341_vm10, %v934_v27, 0  ;;  %1907 = vmatprep.subr.msk.bf16.mxu1 %vm341_vm10, %v934_v27 }
 0xe59   :  { %1846 = vmatpush3.bf16.xpose.msra.mxu1 %v944_v30 }
 0xe5a   :  { %v930_v31 = vpack.c.bf16 %v1933_v28, %v1932_v29 }
 0xe5c   :  { %935 = vrot.lane.b32.xlu1 %v930_v31, %s2060_s27 }
 0xece   :  { %v936_v32 = vpop.permute.xlu1 %935 }
 0xecf   :  { %v947_v33 = vsel %vm341_vm10, %v936_v32, 0  ;;  %1908 = vmatprep.subr.msk.bf16.mxu1 %vm341_vm10, %v936_v32 }
 0xed0   :  { %1848 = vmatpush3.bf16.xpose.msra.mxu1 %v947_v33 }
 0xed1   :  { %1869 = vmatprep.subr.bf16.mxu1 %v2057_v5 }
 0xed7   :  { %1850 = vmatmul.mubr.msk.bf16.vlgmr.msra.gmra.mrb[20].mxu1 %vm341_vm10, %v930_v31 }
 0xed8   :  { %1873 = vmatprep.mubr.msk.bf16.mxu1 %vm2058_vm0, %v2057_v5 }
 0xfaa   :  { %v1851_v34 = vpop.f32.mrb[20].mxu1 }
 0xfab   :  { %v983_v35 = vpop.f32.mrb[21].mxu1  ;;  %v992_v42 = vadd.f32 %v1851_v34, %v2296_v24  ;;  %v1665_v34 = vld [vmem:[%s2561_s10 + $0x1] ss:$0 sm:$0xff] }
 0xfac   :  { %v984_v36 = vadd.f32 %v983_v35, %v2280_v17  ;;  %v1852_v37 = vpop.f32.mrb[22].mxu1 }
 0xfad   :  { %v986_v38 = vpop.f32.mrb[23].mxu1  ;;  %v995_v39 = vadd.f32 %v1852_v37, %v2285_v20  ;;  %v1004_v60 = vsel %vm209_vm9, %v992_v42, -inf }
 0xfae   :  { %v987_v40 = vadd.f32 %v986_v38, %v2290_v21  ;;  %v998_v41 = vsel %vm209_vm9, %v984_v36, -inf }
 0xfaf   :  { %999 = vmax.xlane.f32.xlu1 %v998_v41  ;;  %v1007_v44 = vsel %vm209_vm9, %v995_v39, -inf }
 0xfb0   :  { %v1001_v43 = vsel %vm209_vm9, %v987_v40, -inf }
 0xfb1   :  { %1002 = vmax.xlane.f32.xlu0 %v1001_v43 }
 0xfb3   :  { %1008 = vmax.xlane.f32.xlu1 %v1007_v44 }
 0xfb5   :  { %1005 = vmax.xlane.f32.xlu0 %v1004_v60 }
0x103c   :  { %v1000_v17 = vpop.xlane.xlu1 %999 }
0x103d   :  { %v1010_v46 = vsub.f32 %v984_v36, %v1000_v17 }
0x103e   :  { %v1003_v61 = vpop.xlane.xlu0 %1002 }
0x103f   :  { %v1011_v45 = vsub.f32 %v987_v40, %v1003_v61  ;;  %v1014_v24 = vmul.f32 1.442695, %v1010_v46 }
0x1040   :  { %v1009_v20 = vpop.xlane.xlu1 %1008 }
0x1041   :  { %v1013_v21 = vsub.f32 %v995_v39, %v1009_v20  ;;  %v1016_v47 = vmul.f32 1.442695, %v1011_v45 }
0x1042   :  { %v1006_v48 = vpop.xlane.xlu0 %1005 }
0x1043   :  { %v1020_v49 = vmul.f32 1.442695, %v1013_v21  ;;  %v1012_v50 = vsub.f32 %v992_v42, %v1006_v48 }
0x1045   :  { %2002 = vpow2.f32 %v1020_v49  ;;  %v1018_v51 = vmul.f32 1.442695, %v1012_v50  ;;  %v1961_v49 = vld [vmem:[%s2564_s13 + $0x18] sm:$0xff]  }
0x1046   :  { %2004 = vpow2.f32 %v1016_v47 }
0x1047   :  { %2006 = vpow2.f32 %v1018_v51 }
0x1048   :  { %2008 = vpow2.f32 %v1014_v24 }
0x104f   :  { %v2003_v52 = vpop.eup %2002 }
0x1050   :  { %v2005_v53 = vpop.eup %2004  ;;  %v1031_v54 = vsel %vm209_vm9, %v2003_v52, 0.0 }
0x1051   :  { %v2007_v55 = vpop.eup %2006  ;;  %1032 = vadd.xlane.f32.xlu1 %v1031_v54  ;;  %v1025_v58 = vsel %vm209_vm9, %v2005_v53, 0.0 }
0x1052   :  { %v1028_v56 = vsel %vm209_vm9, %v2007_v55, 0.0  ;;  %v2009_v57 = vpop.eup %2008 }
0x1053   :  { %1029 = vadd.xlane.f32.xlu0 %v1028_v56  ;;  %v1022_v59 = vsel %vm209_vm9, %v2009_v57, 0.0 }
0x1055   :  { %1026 = vadd.xlane.f32.xlu1 %v1025_v58 }
0x1057   :  { %1023 = vadd.xlane.f32.xlu0 %v1022_v59 }
0x1066   :  { %1046 = vrot.lane.b32.xlu1 %v930_v31, %s2061_s5 }
0x106d   :  { %1044 = vrot.lane.b32.xlu0 %v2406_v25, %s2061_s5 }
0x10de   :  { %v1033_v62 = vpop.xlane.xlu1 %1032 }
0x10e0   :  { %v1030_v63 = vpop.xlane.xlu0 %1029 }
0x10e1   :  { %2010 = vrcp.f32 %v1030_v63  ;;  %v1672_v63 = vld [vmem:[%s2563_s12 + $0x1] ss:$0 sm:$0xff] }
0x10e2   :  { %v1027_v0 = vpop.xlane.xlu1 %1026 }
0x10e3   :  { %2012 = vrcp.f32 %v1027_v0 }
0x10e4   :  { %2014 = vrcp.f32 %v1033_v62  ;;  %v1024_v1 = vpop.xlane.xlu0 %1023 }
0x10e5   :  { %2016 = vrcp.f32 %v1024_v1 }
0x10e6   :  { %v1047_v3 = vpop.permute.xlu1 %1046 }
0x10e8   :  { %v1045_v2 = vpop.permute.xlu0 %1044 }
0x10e9   :  { %1853 = vmatprep.subr.bf16.mxu0 %v1045_v2 }
0x10ea   :  { %1854 = vmatpush3.bf16.msra.mxu0 %v1045_v2 }
0x10eb   :  { %1855 = vmatprep.subr.bf16.mxu0 %v1047_v3  ;;  %v2011_v4 = vpop.eup %2010 }
0x10ec   :  { %v1040_v9 = vmul.f32 %v2011_v4, %v2007_v55  ;;  %v1962_v4 = vld [vmem:[%s2566_s15 + $0x20] sm:$0xff]  }
0x10ed   :  { %v2013_v6 = vpop.eup %2012 }
0x10ee   :  { %v2015_v7 = vpop.eup %2014  ;;  %1856 = vmatpush3.bf16.msra.mxu0 %v1047_v3  ;;  %v1039_v13 = vmul.f32 %v2013_v6, %v2005_v53  ;;  %v1963_v6 = vld [vmem:[%s2566_s15 + $0x28] sm:$0xff]  }
0x10ef   :  { %v2017_v8 = vpop.eup %2016  ;;  %1861 = vmatprep.subr.bf16.mxu0 %v2057_v5  ;;  %v1041_v14 = vmul.f32 %v2015_v7, %v2003_v52  ;;  %v1964_v7 = vld [vmem:[%s2566_s15 + $0x30] sm:$0xff]  }
0x10f0   :  { %v1038_v12 = vmul.f32 %v2017_v8, %v2009_v57  ;;  %v1671_v57 = vld [vmem:[%s2562_s11 + $0x1] ss:$0 sm:$0xff]  ;;  %v1965_v8 = vld [vmem:[%s2566_s15 + $0x38] sm:$0xff]  }
0x10f1   :  { %v1043_v16 = vpack.c.bf16 %v1041_v14, %v1040_v9  ;;  %v1678_v9 = vld [vmem:[%s2565_s14 + $0x1] ss:$0 sm:$0xff] }
0x10f2   :  { %v1042_v15 = vpack.c.bf16 %v1039_v13, %v1038_v12 }
0x10f4   :  { %1857 = vmatprep.mubr.msk.bf16.mxu0 %vm209_vm9, %v1042_v15 }
0x10f5   :  { %1858 = vmatmul.mubr.msk.bf16.vlgmr.msra.gmra.mrb[12].mxu0 %vm209_vm9, %v1043_v16 }
0x10f6   :  { %1865 = vmatprep.mubr.msk.bf16.mxu0 %vm2058_vm0, %v2057_v5  ;;  %1862 = vmatpush3.bf16.msra.mxu0 %v1958_v18 }
0x10f7   :  { %1863 = vmatprep.subr.bf16.mxu0 %v2057_v5 }
0x10fa   :  { %1864 = vmatpush3.bf16.msra.mxu0 %v1959_v19 }
0x10fb   :  { %1877 = vmatprep.subr.bf16.mxu0 %v2057_v5 }
0x11c8   :  { %v1859_v22 = vpop.f32.mrb[12].mxu0 }
0x11c9   :  { %v1090_v23 = vpop.f32.mrb[13].mxu0 }
0x11ca   :  { %v1860_v25 = vpop.f32.mrb[14].mxu0 }
0x11cb   :  { %v1934_v26 = vpack.i.bf16 %v1860_v25, %v1859_v22  ;;  %v1093_v27 = vpop.f32.mrb[15].mxu0 }
0x11cd   :  { %1935 = vrot.lane.b32.xlu1 %v1934_v26, %s2062_s28 }
0x123f   :  { %v1936_v28 = vpop.permute.xlu1 %1935 }
0x1240   :  { %v1938_v29 = vunpack.i.h.bf16 %v1936_v28  ;;  %v1937_v30 = vunpack.i.l.bf16 %v1936_v28 }
0x1242   :  { %v1113_v31 = vsel %vm341_vm10, %v1090_v23, %v1937_v30  ;;  %v1114_v32 = vsel %vm341_vm10, %v1093_v27, %v1938_v29 }
0x1243   :  { %v1115_v33 = vpack.c.bf16 %v1114_v32, %v1113_v31 }
0x1245   :  { %1866 = vmatmul.mubr.msk.bf16.vlgmr.msra.gmra.mrb[16].mxu0 %vm209_vm9, %v1115_v33 }
0x1246   :  { %1885 = vmatprep.mubr.msk.bf16.mxu0 %vm2058_vm0, %v2057_v5  ;;  %1878 = vmatpush3.bf16.msra.mxu0 %v1962_v4 }
0x1247   :  { %1879 = vmatprep.subr.bf16.mxu0 %v2057_v5 }
0x124a   :  { %1880 = vmatpush3.bf16.msra.mxu0 %v1963_v6 }
0x124b   :  { %1881 = vmatprep.subr.bf16.mxu0 %v2057_v5 }
0x124e   :  { %1882 = vmatpush3.bf16.msra.mxu0 %v1964_v7 }
0x124f   :  { %1883 = vmatprep.subr.bf16.mxu0 %v2057_v5 }
0x1252   :  { %1884 = vmatpush3.bf16.msra.mxu0 %v1965_v8  ;;  %v1700_v8 = vld [vmem:[%s2598_s1 + $0x1] ss:$0 sm:$0xff] }
0x1318   :  { %v1178_v35 = vpop.f32.mrb[16].mxu0 }
0x1319   :  { %v1179_v36 = vadd.f32 %v1665_v34, %v1178_v35  ;;  %v1867_v37 = vpop.f32.mrb[17].mxu0 }
0x131a   :  { %v1181_v38 = vpop.f32.mrb[18].mxu0 }
0x131b   :  { %v1182_v39 = vadd.f32 %v1665_v34, %v1181_v38  ;;  %v1868_v40 = vpop.f32.mrb[19].mxu0  ;;  %v1185_v41 = vadd.f32 %v1179_v36, %v2396_v10 }
0x131d   :  { %v1191_v42 = vsel %vm209_vm9, %v1185_v41, 0.0  ;;  %v1186_v43 = vadd.f32 %v1182_v39, %v2398_v11  ;;  %v1960_v11 = vld [vmem:[%s2564_s13 + $0x10] sm:$0xff]  }
0x131e   :  { %1192 = vadd.xlane.f32.xlu0 %v1191_v42  ;;  %1870 = vmatpush3.bf16.msra.mxu1 %v1960_v11 }
0x131f   :  { %v1194_v44 = vsel %vm209_vm9, %v1186_v43, 0.0  ;;  %1871 = vmatprep.subr.bf16.mxu1 %v2057_v5 }
0x1320   :  { %1195 = vadd.xlane.f32.xlu1 %v1194_v44 }
0x1322   :  { %1872 = vmatpush3.bf16.msra.mxu1 %v1961_v49 }
0x1323   :  { %1889 = vmatprep.subr.bf16.mxu1 %v2057_v5 }
0x13ab   :  { %v1193_v60 = vpop.xlane.xlu0 %1192 }
0x13ac   :  { %v1197_v17 = vmul.f32 0.03125, %v1193_v60 }
0x13ad   :  { %v1196_v61 = vpop.xlane.xlu1 %1195 }
0x13ae   :  { %v1199_v45 = vsub.f32 %v1185_v41, %v1197_v17  ;;  %v1198_v20 = vmul.f32 0.03125, %v1196_v61  ;;  %v1691_v41 = vld [vmem:[%s2567_s16 + $0x1] ss:$0 sm:$0xff] }
0x13b0   :  { %v1200_v46 = vsub.f32 %v1186_v43, %v1198_v20  ;;  %v1201_v21 = vmul.f32 %v1199_v45, %v1199_v45 }
0x13b2   :  { %v1203_v47 = vsel %vm209_vm9, %v1201_v21, 0.0  ;;  %v1202_v48 = vmul.f32 %v1200_v46, %v1200_v46 }
0x13b3   :  { %1204 = vadd.xlane.f32.xlu0 %v1203_v47 }
0x13b4   :  { %v1206_v10 = vsel %vm209_vm9, %v1202_v48, 0.0 }
0x13b7   :  { %1207 = vadd.xlane.f32.xlu0 %v1206_v10 }
0x1440   :  { %v1205_v50 = vpop.xlane.xlu0 %1204 }
0x1441   :  { %v1209_v24 = vmul.f32 0.03125, %v1205_v50 }
0x1443   :  { %v1211_v51 = vadd.f32 1e-12, %v1209_v24 }
0x1444   :  { %v1208_v52 = vpop.xlane.xlu0 %1207 }
0x1445   :  { %2018 = vrsqrt.f32 %v1211_v51  ;;  %v1210_v53 = vmul.f32 0.03125, %v1208_v52 }
0x1447   :  { %v1212_v54 = vadd.f32 1e-12, %v1210_v53 }
0x1449   :  { %2020 = vrsqrt.f32 %v1212_v54  ;;  %v1966_v54 = vld [vmem:[%s2570_s19] sm:$0xff]  }
0x144f   :  { %v2019_v55 = vpop.eup %2018 }
0x1450   :  { %v1215_v56 = vmul.f32 %v2019_v55, %v1199_v45  ;;  %v1967_v55 = vld [vmem:[%s2570_s19 + $0x8] sm:$0xff]  }
0x1452   :  { %v1223_v59 = vmul.f32 %v1671_v57, %v1215_v56 }
0x1453   :  { %v2021_v58 = vpop.eup %2020 }
0x1454   :  { %v1216_v62 = vmul.f32 %v2021_v58, %v1200_v46  ;;  %v1231_v1 = vadd.f32 %v1672_v63, %v1223_v59 }
0x1456   :  { %v1224_v0 = vmul.f32 %v1671_v57, %v1216_v62 }
0x1458   :  { %v1232_v2 = vadd.f32 %v1672_v63, %v1224_v0 }
0x145a   :  { %v1233_v3 = vpack.c.bf16 %v1232_v2, %v1231_v1 }
0x145c   :  { %1874 = vmatmul.mubr.msk.bf16.vlgmr.msra.gmra.mrb[24].mxu1 %vm209_vm9, %v1233_v3  ;;  %v1699_v3 = vld [vmem:[%s2568_s17 + $0x1] ss:$0 sm:$0xff] }
0x145d   :  { %1893 = vmatprep.mubr.msk.bf16.mxu1 %vm2058_vm0, %v2057_v5  ;;  %1890 = vmatpush3.bf16.msra.mxu1 %v1966_v54 }
0x145e   :  { %1891 = vmatprep.subr.bf16.mxu1 %v2057_v5 }
0x1461   :  { %1892 = vmatpush3.bf16.msra.mxu1 %v1967_v55 }
0x1462   :  { %1897 = vmatprep.subr.bf16.mxu1 %v2057_v5 }
0x152f   :  { %v1296_v12 = vpop.f32.mrb[24].mxu1 }
0x1530   :  { %v1297_v13 = vadd.f32 %v1678_v9, %v1296_v12  ;;  %v1875_v14 = vpop.f32.mrb[25].mxu1 }
0x1531   :  { %v1299_v15 = vpop.f32.mrb[26].mxu1 }
0x1532   :  { %v1305_v16 = vmul.f32 0.044715, %v1297_v13  ;;  %v1300_v18 = vadd.f32 %v1678_v9, %v1299_v15  ;;  %v1876_v19 = vpop.f32.mrb[27].mxu1  ;;  %v1303_v35 = vmul.f32 0.5, %v1297_v13 }
0x1533   :  { %v1701_v19 = vld [vmem:[%s2571_s20] ss:$0 sm:$0xff] }
0x1534   :  { %v1307_v22 = vmul.f32 %v1305_v16, %v1297_v13  ;;  %v1306_v23 = vmul.f32 0.044715, %v1300_v18  ;;  %v1304_v36 = vmul.f32 0.5, %v1300_v18  ;;  %v1968_v16 = vld [vmem:[%s2572_s21] sm:$0xff]  }
0x1536   :  { %v1309_v25 = vmul.f32 %v1307_v22, %v1297_v13  ;;  %v1308_v26 = vmul.f32 %v1306_v23, %v1300_v18 }
0x1538   :  { %v1311_v27 = vadd.f32 %v1309_v25, %v1297_v13  ;;  %v1310_v28 = vmul.f32 %v1308_v26, %v1300_v18 }
0x153a   :  { %v1313_v29 = vmul.f32 0.7978846, %v1311_v27  ;;  %v1312_v30 = vadd.f32 %v1310_v28, %v1300_v18  ;;  %v1969_v18 = vld [vmem:[%s2572_s21 + $0x8] sm:$0xff]   ;;  %s2063_s21 = smov [#allocation2]  }
0x153b   :  { %s1603_s3 = sshll.u32 %s2063_s21, 4  ;;  %s1604_s3 = int_to_ptr.vmem [resolvable:$true] %s1603_s3 }
0x153c   :  { %2022 = vtanh.f32 %v1313_v29  ;;  %v1314_v31 = vmul.f32 0.7978846, %v1312_v30  ;;  %s2032_s20 = scalar_lea.vmem %s1604_s3, 32  ;;  %p2037_p1 = scmp.lt.s32.totalorder %s1604_s3, %s1604_s3 }
0x153d   :  { %p2033_p0 = scmp.ne.s32.totalorder %s1604_s3, %s2032_s20  ;;  %p2038_p2 = scmp.lt.s32.totalorder %s2032_s20, %s2032_s20 }
0x153e   :  { %2024 = vtanh.f32 %v1314_v31 }
0x153f   :  { %p2039_p3 = por %p2038_p2, %p2037_p1 }
0x1541   :  { %p2040_p4 = pnand %p2039_p3, %p2033_p0 }
0x1546   :  { %v2023_v32 = vpop.eup %2022 }
0x1547   :  { %v1317_v33 = vadd.f32 1.0, %v2023_v32 }
0x1548   :  { %v2025_v34 = vpop.eup %2024 }
0x1549   :  { %v1318_v37 = vadd.f32 1.0, %v2025_v34  ;;  %v1319_v38 = vmul.f32 %v1317_v33, %v1303_v35 }
0x154b   :  { %v1320_v39 = vmul.f32 %v1318_v37, %v1304_v36 }
0x154d   :  { %v1321_v40 = vpack.c.bf16 %v1320_v39, %v1319_v38 }
0x154f   :  { %1886 = vmatmul.mubr.msk.bf16.vlgmr.msra.gmra.mrb[20].mxu0 %vm760_vm11, %v1321_v40 }
0x1622   :  { %v1400_v42 = vpop.f32.mrb[20].mxu0 }
0x1623   :  { %v1401_v43 = vadd.f32 %v1691_v41, %v1400_v42  ;;  %v1887_v44 = vpop.f32.mrb[21].mxu0 }
0x1624   :  { %v1403_v60 = vpop.f32.mrb[22].mxu0 }
0x1625   :  { %v1404_v17 = vadd.f32 %v1691_v41, %v1403_v60  ;;  %v1888_v61 = vpop.f32.mrb[23].mxu0  ;;  %v1407_v45 = vadd.f32 %v1401_v43, %v1231_v1 }
0x1627   :  { %v1413_v20 = vsel %vm209_vm9, %v1407_v45, 0.0  ;;  %v1408_v46 = vadd.f32 %v1404_v17, %v1232_v2 }
0x1628   :  { %1414 = vadd.xlane.f32.xlu0 %v1413_v20 }
0x1629   :  { %v1416_v21 = vsel %vm209_vm9, %v1408_v46, 0.0 }
0x162a   :  { %1417 = vadd.xlane.f32.xlu1 %v1416_v21 }
0x16b5   :  { %v1415_v47 = vpop.xlane.xlu0 %1414 }
0x16b6   :  { %v1419_v48 = vmul.f32 0.03125, %v1415_v47 }
0x16b7   :  { %v1418_v10 = vpop.xlane.xlu1 %1417 }
0x16b8   :  { %v1421_v11 = vsub.f32 %v1407_v45, %v1419_v48  ;;  %v1420_v49 = vmul.f32 0.03125, %v1418_v10 }
0x16ba   :  { %v1422_v50 = vsub.f32 %v1408_v46, %v1420_v49  ;;  %v1423_v24 = vmul.f32 %v1421_v11, %v1421_v11 }
0x16bc   :  { %v1425_v51 = vsel %vm209_vm9, %v1423_v24, 0.0  ;;  %v1424_v52 = vmul.f32 %v1422_v50, %v1422_v50 }
0x16bd   :  { %1426 = vadd.xlane.f32.xlu0 %v1425_v51 }
0x16be   :  { %v1428_v53 = vsel %vm209_vm9, %v1424_v52, 0.0 }
0x16bf   :  { %1429 = vadd.xlane.f32.xlu1 %v1428_v53 }
0x174a   :  { %v1427_v56 = vpop.xlane.xlu0 %1426 }
0x174b   :  { %v1431_v57 = vmul.f32 0.03125, %v1427_v56 }
0x174c   :  { %v1430_v58 = vpop.xlane.xlu1 %1429 }
0x174d   :  { %v1433_v59 = vadd.f32 1e-12, %v1431_v57  ;;  %v1432_v62 = vmul.f32 0.03125, %v1430_v58 }
0x174f   :  { %2026 = vrsqrt.f32 %v1433_v59  ;;  %v1434_v63 = vadd.f32 1e-12, %v1432_v62 }
0x1751   :  { %2028 = vrsqrt.f32 %v1434_v63 }
0x1759   :  { %v2027_v0 = vpop.eup %2026 }
0x175a   :  { %v1437_v1 = vmul.f32 %v2027_v0, %v1421_v11 }
0x175b   :  { %v2029_v2 = vpop.eup %2028 }
0x175c   :  { %v1438_v4 = vmul.f32 %v2029_v2, %v1422_v50  ;;  %v1445_v6 = vmul.f32 %v1699_v3, %v1437_v1 }
0x175e   :  { %v1446_v7 = vmul.f32 %v1699_v3, %v1438_v4  ;;  %v1453_v12 = vadd.f32 %v1700_v8, %v1445_v6 }
0x1760   :  { %v1454_v9 = vadd.f32 %v1700_v8, %v1446_v7 }
0x1762   :  { %v1456_v13 = vrot.slane %v1454_v9, 7 }
0x1764   :  { %v1459_v14 = vsel %vm1458_vm12, %v1453_v12, %v1456_v13 }
0x1765   :  { %v1460_v15 = vpack.c.bf16 %v1459_v14, %v1459_v14 }
0x1767   :  { %1894 = vmatmul.mubr.msk.bf16.vlgmr.msra.gmra.mrb[28].mxu1 %vm209_vm9, %v1460_v15 }
0x1768   :  { %1901 = vmatprep.mubr.msk.bf16.mxu1 %vm2058_vm0, %v2057_v5  ;;  %1898 = vmatpush3.bf16.msra.mxu1 %v1968_v16 }
0x1769   :  { %1899 = vmatprep.subr.bf16.mxu1 %v2057_v5  ;;  %v1705_v5 = vld [vmem:[%s2573_s22] ss:$0 sm:$0xff] }
0x176c   :  { %1900 = vmatpush3.bf16.msra.mxu1 %v1969_v18 }
0x183a   :  { %v1521_v22 = vpop.f32.mrb[28].mxu1 }
0x183b   :  { %v1522_v23 = vadd.f32 %v1701_v19, %v1521_v22  ;;  %v1895_v25 = vpop.f32.mrb[29].mxu1 }
0x183c   :  { %v1524_v26 = vpop.f32.mrb[30].mxu1 }
0x183d   :  { %2030 = vtanh.f32 %v1522_v23  ;;  %v1896_v27 = vpop.f32.mrb[31].mxu1 }
0x1847   :  { %v2031_v28 = vpop.eup %2030 }
0x1848   :  { %v1528_v29 = vpack.c.bf16 %v2031_v28, %v2031_v28 }
0x184a   :  { %1902 = vmatmul.mubr.msk.bf16.vlgmr.msra.gmra.mrb[32].mxu1 %vm209_vm9, %v1528_v29 }
0x191d   :  { %v1589_v30 = vpop.f32.mrb[32].mxu1 }
0x191e   :  { %v1590_v31 = vadd.f32 %v1705_v5, %v1589_v30  ;;  %v1903_v32 = vpop.f32.mrb[33].mxu1 }
0x191f   :  { %v1592_v33 = vpop.f32.mrb[34].mxu1 }
0x1920   :  { %v1904_v34 = vpop.f32.mrb[35].mxu1  ;;  %1596 = vst.msk [vmem:[#allocation2] sm:$0x3] %vm1595_vm13, %v1590_v31 }
0x1921   :  { %2043 = shalt.err (!%p2040_p4)
}
0x1922   :  { %s2044_s22 = scalar_lea.hbm %s2574_s23, 32 }
0x1923   :  { %p2045_p5 = scmp.ne.s32.totalorder %s2574_s23, %s2044_s22  ;;  %p2048_p6 = scmp.lt.u32.totalorder %s2044_s22, %s2574_s23 }
0x1925   :  { %p2050_p7 = pnand %p2048_p6, %p2045_p5 }
0x1927   :  { %2053 = shalt.err (!%p2050_p7)
}
0x1928   :  { %1606 = dma.vmem_to_hbm [thread:$0]  %s1604_s3, 32, %s2574_s23, [#allocation3]  }
0x1929   :  { %2054 = dma.done.wait [#allocation3], 32  }
0x192a   :  { %2055 = vsyncadd [#allocation3], 4294967264 }
0x192b   :  { %1610 = vsyncpa [#allocation3], 1 }

</bundles_post_ra>
